<compile_context>
chip_gen: v7x
topology: tpu7x:2x2x1
jax: 0.10.0
libtpu: 0.0.40
codegen_flags: <defaults>
</compile_context>

<pallas_src>
import jax
import jax.numpy as jnp
from jax.experimental import pallas as pl
from jax.experimental.pallas import tpu as pltpu

SCALING_FACTOR = 0.18215
GN_EPS = 1e-6
GN_GROUPS = 8
C0, C1, LATENT = 32, 64, 4
CIN_PAD = 8   # pad the 3-channel image to 8 channels (zero weights => exact)

_COMPILER_PARAMS = pltpu.CompilerParams(
    dimension_semantics=("parallel",),
    vmem_limit_bytes=32 * 1024 * 1024,
)


# ----------------------------------------------------------------------------
# Fused kernel: [GroupNorm+SiLU] -> 3x3 conv (pad=1, stride 1|2) [+ residual]
#               [+ DiagonalGaussian sample * scaling_factor]
# One image per grid step (grid over batch, "parallel").
# ----------------------------------------------------------------------------
def _make_conv_block_kernel(*, H, W, Cin, Cout, has_gn, has_res, has_noise,
                            stride, groups, eps, sample_scale):
    Ho, Wo = H // stride, W // stride

    def kernel(*refs):
        o_ref, xp_ref, pm_ref = refs[-3], refs[-2], refs[-1]
        ins = list(refs[:-3])
        x_ref = ins.pop(0)
        gamma_ref = ins.pop(0) if has_gn else None
        beta_ref = ins.pop(0) if has_gn else None
        w_ref = ins.pop(0)
        b_ref = ins.pop(0)
        res_ref = ins.pop(0) if has_res else None
        noise_ref = ins.pop(0) if has_noise else None

        x = x_ref[0].astype(jnp.float32)                         # (H, W, Cin)

        # ---- GroupNorm + SiLU, lane-dense (no per-group channel slicing) ----
        if has_gn:
            cg = Cin // groups
            x2 = x.reshape(H * W, Cin)
            gamma = gamma_ref[...]                               # (1, Cin) f32
            beta = beta_ref[...]
            # one-hot group selectors from 2-D iota
            ch = jax.lax.broadcasted_iota(jnp.int32, (Cin, groups), 0)
            gr = jax.lax.broadcasted_iota(jnp.int32, (Cin, groups), 1)
            sel = (ch // cg == gr).astype(jnp.float32)           # (Cin, G)
            gr_t = jax.lax.broadcasted_iota(jnp.int32, (groups, Cin), 0)
            ch_t = jax.lax.broadcasted_iota(jnp.int32, (groups, Cin), 1)
            sel_t = (ch_t // cg == gr_t).astype(jnp.float32)     # (G, Cin)
            cnt = float(H * W * cg)

            csum = jnp.sum(x2, axis=0, keepdims=True)            # (1, Cin)
            gmean = jnp.dot(csum, sel,
                            preferred_element_type=jnp.float32) / cnt
            mean_c = jnp.dot(gmean, sel_t,
                             preferred_element_type=jnp.float32)  # (1, Cin)
            d = x2 - mean_c
            dsq = jnp.sum(d * d, axis=0, keepdims=True)          # (1, Cin)
            gvar = jnp.dot(dsq, sel,
                           preferred_element_type=jnp.float32) / cnt
            var_c = jnp.dot(gvar, sel_t,
                            preferred_element_type=jnp.float32)  # (1, Cin)
            y = d * jax.lax.rsqrt(var_c + eps) * gamma + beta
            y = y * jax.nn.sigmoid(y)                            # SiLU
            act = y.reshape(H, W, Cin)
        else:
            act = x

        # ---- zero-padded activation (pad=1) kept in a VMEM scratch ----------
        xp_ref[...] = jnp.zeros(xp_ref.shape, xp_ref.dtype)
        xp_ref[1:H + 1, 1:W + 1, :] = act

        # ---- im2col into a (H*W, 9*Cin) bf16 VMEM scratch (deep-K operand) --
        idx = 0
        for kh in range(3):
            for kw in range(3):
                patch = xp_ref[kh:kh + H, kw:kw + W, :]          # (H, W, Cin)
                pm_ref[:, idx * Cin:(idx + 1) * Cin] = (
                    patch.reshape(H * W, Cin).astype(pm_ref.dtype))
                idx += 1

        # ---- single MXU matmul: (H*W, 9*Cin) x (9*Cin, Cout), f32 accum -----
        acc = jnp.dot(pm_ref[...], w_ref[...],
                      preferred_element_type=jnp.float32)        # (H*W, Cout)

        if stride == 2:
            # Pick the even output rows/cols with a 0/1 selection matmul so
            # only (Ho, Wo, Cout) is written back to HBM (no strided access).
            r = jax.lax.broadcasted_iota(jnp.int32, (Ho * Wo, H * W), 0)
            c = jax.lax.broadcasted_iota(jnp.int32, (Ho * Wo, H * W), 1)
            src = (r // Wo) * (2 * W) + (r % Wo) * 2
            sel_p = (c == src).astype(jnp.float32)
            acc = jnp.dot(sel_p, acc, preferred_element_type=jnp.float32)

        y3 = (acc + b_ref[...]).reshape(Ho, Wo, Cout)
        if has_res:
            y3 = y3 + res_ref[0].astype(jnp.float32)

        if has_noise:
            # DiagonalGaussianDistribution.sample() * scaling_factor (fused).
            latents = Cout // 2
            mean = y3[:, :, :latents]
            logvar = jnp.clip(y3[:, :, latents:], -30.0, 20.0)
            std = jnp.exp(0.5 * logvar)
            z = (mean + std * noise_ref[0].astype(jnp.float32)) * sample_scale
            o_ref[...] = z[None].astype(o_ref.dtype)
        else:
            o_ref[...] = y3[None].astype(o_ref.dtype)

    return kernel


def conv_block(x, w9, b, *, gamma=None, beta=None, residual=None, noise=None,
               stride=1, sample_scale=SCALING_FACTOR,
               groups=GN_GROUPS, eps=GN_EPS):
    """Fused [GN+SiLU]->conv3x3[+res][+sample] over an NHWC activation."""
    N, H, W, Cin = x.shape
    Cout = w9.shape[-1]
    Ho, Wo = H // stride, W // stride
    has_gn = gamma is not None
    has_res = residual is not None
    has_noise = noise is not None
    if has_noise:
        out_c = Cout // 2
        out_dtype = jnp.float32          # final latent in f32
    else:
        out_c = Cout
        out_dtype = jnp.bfloat16         # intermediate activations in bf16

    in_specs = [pl.BlockSpec((1, H, W, Cin), lambda n: (n, 0, 0, 0))]
    args = [x]
    if has_gn:
        in_specs.append(pl.BlockSpec((1, Cin), lambda n: (0, 0)))
        in_specs.append(pl.BlockSpec((1, Cin), lambda n: (0, 0)))
        args.append(gamma.reshape(1, Cin).astype(jnp.float32))
        args.append(beta.reshape(1, Cin).astype(jnp.float32))
    in_specs.append(pl.BlockSpec((9 * Cin, Cout), lambda n: (0, 0)))
    in_specs.append(pl.BlockSpec((1, Cout), lambda n: (0, 0)))
    args.append(w9)
    args.append(b.reshape(1, Cout).astype(jnp.float32))
    if has_res:
        in_specs.append(pl.BlockSpec((1, Ho, Wo, Cout), lambda n: (n, 0, 0, 0)))
        args.append(residual)
    if has_noise:
        in_specs.append(pl.BlockSpec((1, Ho, Wo, out_c), lambda n: (n, 0, 0, 0)))
        args.append(noise)

    kernel = _make_conv_block_kernel(
        H=H, W=W, Cin=Cin, Cout=Cout, has_gn=has_gn, has_res=has_res,
        has_noise=has_noise, stride=stride, groups=groups, eps=eps,
        sample_scale=sample_scale)

    return pl.pallas_call(
        kernel,
        out_shape=jax.ShapeDtypeStruct((N, Ho, Wo, out_c), out_dtype),
        grid=(N,),
        in_specs=in_specs,
        out_specs=pl.BlockSpec((1, Ho, Wo, out_c), lambda n: (n, 0, 0, 0)),
        scratch_shapes=[
            pltpu.VMEM((H + 2, W + 2, Cin), jnp.float32),   # padded activation
            pltpu.VMEM((H * W, 9 * Cin), jnp.bfloat16),     # im2col matrix
        ],
        compiler_params=_COMPILER_PARAMS,
    )(*args)


# ----------------------------------------------------------------------------
# Synthetic VAE parameters + parameter prep (reshape / quant-conv folding)
# ----------------------------------------------------------------------------
def init_params(key):
    ks = iter(jax.random.split(key, 32))

    def cw(shape):
        return (jax.random.normal(next(ks), shape) * 0.05).astype(jnp.float32)

    def bias(n):
        return (jax.random.normal(next(ks), (n,)) * 0.01).astype(jnp.float32)

    ones = lambda n: jnp.ones((n,), jnp.float32)
    zeros = lambda n: jnp.zeros((n,), jnp.float32)

    p = {}
    p['conv_in_w'] = cw((3, 3, 3, C0));      p['conv_in_b'] = bias(C0)
    p['r1_gn1_g'] = ones(C0);                p['r1_gn1_b'] = zeros(C0)
    p['r1_c1_w'] = cw((3, 3, C0, C0));       p['r1_c1_b'] = bias(C0)
    p['r1_gn2_g'] = ones(C0);                p['r1_gn2_b'] = zeros(C0)
    p['r1_c2_w'] = cw((3, 3, C0, C0));       p['r1_c2_b'] = bias(C0)
    p['down_w'] = cw((3, 3, C0, C1));        p['down_b'] = bias(C1)
    p['r2_gn1_g'] = ones(C1);                p['r2_gn1_b'] = zeros(C1)
    p['r2_c1_w'] = cw((3, 3, C1, C1));       p['r2_c1_b'] = bias(C1)
    p['r2_gn2_g'] = ones(C1);                p['r2_gn2_b'] = zeros(C1)
    p['r2_c2_w'] = cw((3, 3, C1, C1));       p['r2_c2_b'] = bias(C1)
    p['no_g'] = ones(C1);                    p['no_b'] = zeros(C1)
    p['conv_out_w'] = cw((3, 3, C1, 2 * LATENT)); p['conv_out_b'] = bias(2 * LATENT)
    p['quant_w'] = cw((2 * LATENT, 2 * LATENT));  p['quant_b'] = bias(2 * LATENT)
    return p


def _prep_encoder_params(p):
    """Reshape conv weights to (9*Cin, Cout) bf16, pad conv_in's input channels
    to CIN_PAD, and fold quant_conv (1x1) into conv_out (exact composition)."""
    def w9(w):
        kh, kw, ci, co = w.shape
        return w.reshape(kh * kw * ci, co).astype(jnp.bfloat16)

    w_in = jnp.pad(p['conv_in_w'],
                   ((0, 0), (0, 0), (0, CIN_PAD - p['conv_in_w'].shape[2]), (0, 0)))
    # fold quant_conv:  w'[kh,kw] = conv_out_w[kh,kw] @ quant_w ; b' = b@W + b_q
    w_outq = jnp.einsum('hwim,mo->hwio', p['conv_out_w'], p['quant_w'])
    b_outq = p['conv_out_b'] @ p['quant_w'] + p['quant_b']

    q = {
        'conv_in_w': w9(w_in),        'conv_in_b': p['conv_in_b'],
        'r1_gn1_g': p['r1_gn1_g'],    'r1_gn1_b': p['r1_gn1_b'],
        'r1_c1_w': w9(p['r1_c1_w']),  'r1_c1_b': p['r1_c1_b'],
        'r1_gn2_g': p['r1_gn2_g'],    'r1_gn2_b': p['r1_gn2_b'],
        'r1_c2_w': w9(p['r1_c2_w']),  'r1_c2_b': p['r1_c2_b'],
        'down_w': w9(p['down_w']),    'down_b': p['down_b'],
        'r2_gn1_g': p['r2_gn1_g'],    'r2_gn1_b': p['r2_gn1_b'],
        'r2_c1_w': w9(p['r2_c1_w']),  'r2_c1_b': p['r2_c1_b'],
        'r2_gn2_g': p['r2_gn2_g'],    'r2_gn2_b': p['r2_gn2_b'],
        'r2_c2_w': w9(p['r2_c2_w']),  'r2_c2_b': p['r2_c2_b'],
        'no_g': p['no_g'],            'no_b': p['no_b'],
        'out_w': w9(w_outq),          'out_b': b_outq,
    }
    return q


# ----------------------------------------------------------------------------
# VAE_encode.forward
# ----------------------------------------------------------------------------
def vae_encode(x_nchw, params_a2b, params_b2a, noise, direction):
    """Pick vae (a2b) or vae_b2a (b2a), encode, sample latent, scale."""
    assert direction in ('a2b', 'b2a')
    p = _prep_encoder_params(params_a2b if direction == 'a2b' else params_b2a)

    x = jnp.transpose(x_nchw, (0, 2, 3, 1)).astype(jnp.bfloat16)  # NCHW -> NHWC
    x = jnp.pad(x, ((0, 0), (0, 0), (0, 0), (0, CIN_PAD - x.shape[-1])))

    h = conv_block(x, p['conv_in_w'], p['conv_in_b'])
    # ResNet block 1 (32 ch): GN+SiLU fused into each conv
    t = conv_block(h, p['r1_c1_w'], p['r1_c1_b'],
                   gamma=p['r1_gn1_g'], beta=p['r1_gn1_b'])
    h = conv_block(t, p['r1_c2_w'], p['r1_c2_b'],
                   gamma=p['r1_gn2_g'], beta=p['r1_gn2_b'], residual=h)
    # Downsample (stride-2 conv, 32 -> 64 ch); subsampled inside the kernel
    h = conv_block(h, p['down_w'], p['down_b'], stride=2)
    # ResNet block 2 (64 ch)
    t = conv_block(h, p['r2_c1_w'], p['r2_c1_b'],
                   gamma=p['r2_gn1_g'], beta=p['r2_gn1_b'])
    h = conv_block(t, p['r2_c2_w'], p['r2_c2_b'],
                   gamma=p['r2_gn2_g'], beta=p['r2_gn2_b'], residual=h)
    # norm_out+SiLU + conv_out (quant_conv folded in) + latent sample, one kernel
    z = conv_block(h, p['out_w'], p['out_b'],
                   gamma=p['no_g'], beta=p['no_b'],
                   noise=noise, sample_scale=SCALING_FACTOR)
    return jnp.transpose(z, (0, 3, 1, 2))                         # NHWC -> NCHW


if __name__ == "__main__":
    key = jax.random.PRNGKey(0)
    kx, kn, kpa, kpb = jax.random.split(key, 4)

    N, Cin, H, W = 2, 3, 16, 16
    x = jax.random.normal(kx, (N, Cin, H, W), dtype=jnp.float32)
    params_a2b = init_params(kpa)
    params_b2a = init_params(kpb)

    Hl, Wl = H // 2, W // 2
    noise = jax.random.normal(kn, (N, Hl, Wl, LATENT), dtype=jnp.float32)

    z_a2b = vae_encode(x, params_a2b, params_b2a, noise, 'a2b')
    z_b2a = vae_encode(x, params_a2b, params_b2a, noise, 'b2a')
    z_a2b = jax.block_until_ready(z_a2b)
    z_b2a = jax.block_until_ready(z_b2a)

    assert z_a2b.shape == (N, LATENT, Hl, Wl)
    assert z_b2a.shape == (N, LATENT, Hl, Wl)
    assert bool(jnp.all(jnp.isfinite(z_a2b))) and bool(jnp.all(jnp.isfinite(z_b2a)))
    print("KERNEL_OK")
</pallas_src>

<mosaic_0001>
module attributes {stable_mosaic.version = 11 : i64} {
  func.func @kernel(%arg0: i32, %arg1: memref<1x16x16x8xbf16, #tpu.memory_space<vmem>>, %arg2: memref<72x32xbf16, #tpu.memory_space<vmem>>, %arg3: memref<1x32xf32, #tpu.memory_space<vmem>>, %arg4: memref<1x16x16x32xbf16, #tpu.memory_space<vmem>>, %arg5: memref<18x18x8xf32, #tpu.memory_space<vmem>>, %arg6: memref<256x72xbf16, #tpu.memory_space<vmem>>) attributes {dimension_semantics = [#tpu.dimension_semantics<parallel>], iteration_bounds = array<i64: 2>, scalar_prefetch = 0 : i64, scratch_operands = 2 : i64, tpu.core_type = #tpu.core_type<tc>, window_params = [{transform_indices = @transform_0, window_bounds = array<i64: 1, 16, 16, 8>}, {pipeline_mode = #tpu.pipeline_mode<synchronous>, transform_indices = @transform_1, window_bounds = array<i64: 72, 32>}, {pipeline_mode = #tpu.pipeline_mode<synchronous>, transform_indices = @transform_2, window_bounds = array<i64: 1, 32>}, {transform_indices = @transform_3, window_bounds = array<i64: 1, 16, 16, 32>}]} {
    %c0 = arith.constant 0 : index
    %c0_0 = arith.constant 0 : index
    %c0_1 = arith.constant 0 : index
    %c0_2 = arith.constant 0 : index
    %0 = vector.load %arg1[%c0, %c0_0, %c0_1, %c0_2] : memref<1x16x16x8xbf16, #tpu.memory_space<vmem>>, vector<1x16x16x8xbf16>
    %1 = vector.shape_cast %0 : vector<1x16x16x8xbf16> to vector<16x16x8xbf16>
    %2 = arith.extf %1 : vector<16x16x8xbf16> to vector<16x16x8xf32>
    %cst = arith.constant 0.000000e+00 : f32
    %3 = vector.broadcast %cst : f32 to vector<18x18x8xf32>
    %c0_3 = arith.constant 0 : index
    %c0_4 = arith.constant 0 : index
    %c0_5 = arith.constant 0 : index
    %4 = vector.load %arg5[%c0_3, %c0_4, %c0_5] : memref<18x18x8xf32, #tpu.memory_space<vmem>>, vector<18x18x8xf32>
    tpu.vector_store %arg5[%c0_3, %c0_4, %c0_5], %3 {strides = array<i32>} : memref<18x18x8xf32, #tpu.memory_space<vmem>>, vector<18x18x8xf32>,
    %c1 = arith.constant 1 : index
    %c1_6 = arith.constant 1 : index
    %c0_7 = arith.constant 0 : index
    %5 = vector.load %arg5[%c1, %c1_6, %c0_7] : memref<18x18x8xf32, #tpu.memory_space<vmem>>, vector<16x16x8xf32>
    tpu.vector_store %arg5[%c1, %c1_6, %c0_7], %2 {strides = array<i32>} : memref<18x18x8xf32, #tpu.memory_space<vmem>>, vector<16x16x8xf32>,
    %c0_8 = arith.constant 0 : index
    %c0_9 = arith.constant 0 : index
    %c0_10 = arith.constant 0 : index
    %6 = vector.load %arg5[%c0_8, %c0_9, %c0_10] : memref<18x18x8xf32, #tpu.memory_space<vmem>>, vector<16x16x8xf32>
    %7 = vector.shape_cast %6 : vector<16x16x8xf32> to vector<256x8xf32>
    %8 = arith.truncf %7 : vector<256x8xf32> to vector<256x8xbf16>
    %c0_11 = arith.constant 0 : index
    %c0_12 = arith.constant 0 : index
    %9 = vector.load %arg6[%c0_11, %c0_12] : memref<256x72xbf16, #tpu.memory_space<vmem>>, vector<256x8xbf16>
    tpu.vector_store %arg6[%c0_11, %c0_12], %8 {strides = array<i32>} : memref<256x72xbf16, #tpu.memory_space<vmem>>, vector<256x8xbf16>,
    %c0_13 = arith.constant 0 : index
    %c1_14 = arith.constant 1 : index
    %c0_15 = arith.constant 0 : index
    %10 = vector.load %arg5[%c0_13, %c1_14, %c0_15] : memref<18x18x8xf32, #tpu.memory_space<vmem>>, vector<16x16x8xf32>
    %11 = vector.shape_cast %10 : vector<16x16x8xf32> to vector<256x8xf32>
    %12 = arith.truncf %11 : vector<256x8xf32> to vector<256x8xbf16>
    %c0_16 = arith.constant 0 : index
    %c8 = arith.constant 8 : index
    %13 = vector.load %arg6[%c0_16, %c8] : memref<256x72xbf16, #tpu.memory_space<vmem>>, vector<256x8xbf16>
    tpu.vector_store %arg6[%c0_16, %c8], %12 {strides = array<i32>} : memref<256x72xbf16, #tpu.memory_space<vmem>>, vector<256x8xbf16>,
    %c0_17 = arith.constant 0 : index
    %c2 = arith.constant 2 : index
    %c0_18 = arith.constant 0 : index
    %14 = vector.load %arg5[%c0_17, %c2, %c0_18] : memref<18x18x8xf32, #tpu.memory_space<vmem>>, vector<16x16x8xf32>
    %15 = vector.shape_cast %14 : vector<16x16x8xf32> to vector<256x8xf32>
    %16 = arith.truncf %15 : vector<256x8xf32> to vector<256x8xbf16>
    %c0_19 = arith.constant 0 : index
    %c16 = arith.constant 16 : index
    %17 = vector.load %arg6[%c0_19, %c16] : memref<256x72xbf16, #tpu.memory_space<vmem>>, vector<256x8xbf16>
    tpu.vector_store %arg6[%c0_19, %c16], %16 {strides = array<i32>} : memref<256x72xbf16, #tpu.memory_space<vmem>>, vector<256x8xbf16>,
    %c1_20 = arith.constant 1 : index
    %c0_21 = arith.constant 0 : index
    %c0_22 = arith.constant 0 : index
    %18 = vector.load %arg5[%c1_20, %c0_21, %c0_22] : memref<18x18x8xf32, #tpu.memory_space<vmem>>, vector<16x16x8xf32>
    %19 = vector.shape_cast %18 : vector<16x16x8xf32> to vector<256x8xf32>
    %20 = arith.truncf %19 : vector<256x8xf32> to vector<256x8xbf16>
    %c0_23 = arith.constant 0 : index
    %c24 = arith.constant 24 : index
    %21 = vector.load %arg6[%c0_23, %c24] : memref<256x72xbf16, #tpu.memory_space<vmem>>, vector<256x8xbf16>
    tpu.vector_store %arg6[%c0_23, %c24], %20 {strides = array<i32>} : memref<256x72xbf16, #tpu.memory_space<vmem>>, vector<256x8xbf16>,
    %c1_24 = arith.constant 1 : index
    %c1_25 = arith.constant 1 : index
    %c0_26 = arith.constant 0 : index
    %22 = vector.load %arg5[%c1_24, %c1_25, %c0_26] : memref<18x18x8xf32, #tpu.memory_space<vmem>>, vector<16x16x8xf32>
    %23 = vector.shape_cast %22 : vector<16x16x8xf32> to vector<256x8xf32>
    %24 = arith.truncf %23 : vector<256x8xf32> to vector<256x8xbf16>
    %c0_27 = arith.constant 0 : index
    %c32 = arith.constant 32 : index
    %25 = vector.load %arg6[%c0_27, %c32] : memref<256x72xbf16, #tpu.memory_space<vmem>>, vector<256x8xbf16>
    tpu.vector_store %arg6[%c0_27, %c32], %24 {strides = array<i32>} : memref<256x72xbf16, #tpu.memory_space<vmem>>, vector<256x8xbf16>,
    %c1_28 = arith.constant 1 : index
    %c2_29 = arith.constant 2 : index
    %c0_30 = arith.constant 0 : index
    %26 = vector.load %arg5[%c1_28, %c2_29, %c0_30] : memref<18x18x8xf32, #tpu.memory_space<vmem>>, vector<16x16x8xf32>
    %27 = vector.shape_cast %26 : vector<16x16x8xf32> to vector<256x8xf32>
    %28 = arith.truncf %27 : vector<256x8xf32> to vector<256x8xbf16>
    %c0_31 = arith.constant 0 : index
    %c40 = arith.constant 40 : index
    %29 = vector.load %arg6[%c0_31, %c40] : memref<256x72xbf16, #tpu.memory_space<vmem>>, vector<256x8xbf16>
    tpu.vector_store %arg6[%c0_31, %c40], %28 {strides = array<i32>} : memref<256x72xbf16, #tpu.memory_space<vmem>>, vector<256x8xbf16>,
    %c2_32 = arith.constant 2 : index
    %c0_33 = arith.constant 0 : index
    %c0_34 = arith.constant 0 : index
    %30 = vector.load %arg5[%c2_32, %c0_33, %c0_34] : memref<18x18x8xf32, #tpu.memory_space<vmem>>, vector<16x16x8xf32>
    %31 = vector.shape_cast %30 : vector<16x16x8xf32> to vector<256x8xf32>
    %32 = arith.truncf %31 : vector<256x8xf32> to vector<256x8xbf16>
    %c0_35 = arith.constant 0 : index
    %c48 = arith.constant 48 : index
    %33 = vector.load %arg6[%c0_35, %c48] : memref<256x72xbf16, #tpu.memory_space<vmem>>, vector<256x8xbf16>
    tpu.vector_store %arg6[%c0_35, %c48], %32 {strides = array<i32>} : memref<256x72xbf16, #tpu.memory_space<vmem>>, vector<256x8xbf16>,
    %c2_36 = arith.constant 2 : index
    %c1_37 = arith.constant 1 : index
    %c0_38 = arith.constant 0 : index
    %34 = vector.load %arg5[%c2_36, %c1_37, %c0_38] : memref<18x18x8xf32, #tpu.memory_space<vmem>>, vector<16x16x8xf32>
    %35 = vector.shape_cast %34 : vector<16x16x8xf32> to vector<256x8xf32>
    %36 = arith.truncf %35 : vector<256x8xf32> to vector<256x8xbf16>
    %c0_39 = arith.constant 0 : index
    %c56 = arith.constant 56 : index
    %37 = vector.load %arg6[%c0_39, %c56] : memref<256x72xbf16, #tpu.memory_space<vmem>>, vector<256x8xbf16>
    tpu.vector_store %arg6[%c0_39, %c56], %36 {strides = array<i32>} : memref<256x72xbf16, #tpu.memory_space<vmem>>, vector<256x8xbf16>,
    %c2_40 = arith.constant 2 : index
    %c2_41 = arith.constant 2 : index
    %c0_42 = arith.constant 0 : index
    %38 = vector.load %arg5[%c2_40, %c2_41, %c0_42] : memref<18x18x8xf32, #tpu.memory_space<vmem>>, vector<16x16x8xf32>
    %39 = vector.shape_cast %38 : vector<16x16x8xf32> to vector<256x8xf32>
    %40 = arith.truncf %39 : vector<256x8xf32> to vector<256x8xbf16>
    %c0_43 = arith.constant 0 : index
    %c64 = arith.constant 64 : index
    %41 = vector.load %arg6[%c0_43, %c64] : memref<256x72xbf16, #tpu.memory_space<vmem>>, vector<256x8xbf16>
    tpu.vector_store %arg6[%c0_43, %c64], %40 {strides = array<i32>} : memref<256x72xbf16, #tpu.memory_space<vmem>>, vector<256x8xbf16>,
    %c0_44 = arith.constant 0 : index
    %c0_45 = arith.constant 0 : index
    %42 = vector.load %arg6[%c0_44, %c0_45] : memref<256x72xbf16, #tpu.memory_space<vmem>>, vector<256x72xbf16>
    %c0_46 = arith.constant 0 : index
    %c0_47 = arith.constant 0 : index
    %43 = vector.load %arg2[%c0_46, %c0_47] : memref<72x32xbf16, #tpu.memory_space<vmem>>, vector<72x32xbf16>
    %cst_48 = arith.constant dense<0.000000e+00> : vector<256x32xf32>
    %44 = tpu.matmul %42, %43, %cst_48 {dimension_numbers = #tpu.dot_dimension_numbers<[1], [0], [0], [1], [0, 0, 1, 1], [], []>} : vector<256x72xbf16>, vector<72x32xbf16>, vector<256x32xf32> -> vector<256x32xf32>
    %c0_49 = arith.constant 0 : index
    %c0_50 = arith.constant 0 : index
    %45 = vector.load %arg3[%c0_49, %c0_50] : memref<1x32xf32, #tpu.memory_space<vmem>>, vector<1x32xf32>
    %46 = vector.broadcast %45 : vector<1x32xf32> to vector<256x32xf32>
    %47 = arith.addf %44, %46 : vector<256x32xf32>
    %48 = vector.shape_cast %47 : vector<256x32xf32> to vector<16x16x32xf32>
    %49 = vector.shape_cast %48 : vector<16x16x32xf32> to vector<1x16x16x32xf32>
    %50 = arith.truncf %49 : vector<1x16x16x32xf32> to vector<1x16x16x32xbf16>
    %c0_51 = arith.constant 0 : index
    %c0_52 = arith.constant 0 : index
    %c0_53 = arith.constant 0 : index
    %c0_54 = arith.constant 0 : index
    %51 = vector.load %arg4[%c0_51, %c0_52, %c0_53, %c0_54] : memref<1x16x16x32xbf16, #tpu.memory_space<vmem>>, vector<1x16x16x32xbf16>
    tpu.vector_store %arg4[%c0_51, %c0_52, %c0_53, %c0_54], %50 {strides = array<i32>} : memref<1x16x16x32xbf16, #tpu.memory_space<vmem>>, vector<1x16x16x32xbf16>,
    return
  }
  func.func @transform_0(%arg0: i32) -> (i32, i32, i32, i32) {
    %c0_i32 = arith.constant 0 : i32
    %c0_i32_0 = arith.constant 0 : i32
    %c0_i32_1 = arith.constant 0 : i32
    %c0_i32_2 = arith.constant 0 : i32
    return %arg0, %c0_i32, %c0_i32_0, %c0_i32_1 : i32, i32, i32, i32
  }
  func.func @transform_1(%arg0: i32) -> (i32, i32) {
    %c0_i32 = arith.constant 0 : i32
    %c0_i32_0 = arith.constant 0 : i32
    %c0_i32_1 = arith.constant 0 : i32
    return %c0_i32, %c0_i32_0 : i32, i32
  }
  func.func @transform_2(%arg0: i32) -> (i32, i32) {
    %c0_i32 = arith.constant 0 : i32
    %c0_i32_0 = arith.constant 0 : i32
    %c0_i32_1 = arith.constant 0 : i32
    return %c0_i32, %c0_i32_0 : i32, i32
  }
  func.func @transform_3(%arg0: i32) -> (i32, i32, i32, i32) {
    %c0_i32 = arith.constant 0 : i32
    %c0_i32_0 = arith.constant 0 : i32
    %c0_i32_1 = arith.constant 0 : i32
    %c0_i32_2 = arith.constant 0 : i32
    return %arg0, %c0_i32, %c0_i32_0, %c0_i32_1 : i32, i32, i32, i32
  }
}

</mosaic_0001>

<bundles_post_ra>
// kernel: tpu_custom_call.1
= control target key start
LH: loop header
LB: loop body
LE: loop exit
PB: predicated region body
PF: predicated region fallthrough
CT: control target
= control target key end

     0   :  { %8 = vsyncpa [#allocation5], 0  ;;  %s3121_s0 = inlined_call_operand.vmem [shape: bf16[2,16,16,8], index: 0, kind: input, shape index: {}]   ;;  %s3122_s1 = inlined_call_operand.vmem [shape: bf16[72,32], index: 1, kind: input, shape index: {}]   ;;  %s3123_s2 = inlined_call_operand.vmem [shape: f32[1,32], index: 2, kind: input, shape index: {}]   ;;  %s3124_s3 = inlined_call_operand.hbm [shape: bf16[2,16,16,32], index: 3, kind: output, shape index: {}]  }
   0x1   :  { %10 = vsyncpa [#allocation5 + $0x1], 0  ;;  %s2333_s12 = smov 0   ;;  %s2335_s13 = smov 0  }
   0x2   :  { %s2337_s14 = smov 0   ;;  %s2339_s15 = smov 0  }
   0x3 LB: > { %s2354_s16 = sadd.s32 4294967295, %s2300_s15   ;;  %s1930_s17 = sadd.s32 4294967294, %s2300_s15   ;;  %s2300_s15 = sphi %s2339_s15, %s3130_s15   ;;  %s2296_s14 = sphi %s2337_s14, %s3129_s14   ;;  %s2292_s13 = sphi %s2335_s13, %s3128_s13   ;;  %s2288_s12 = sphi %s2333_s12, %s3127_s12  }
   0x4   : > { %s2358_s18 = sadd.s32 1, %s2300_s15   ;;  %s91_s19 = sadd.s32 1, %s2296_s14 }
   0x5   : > { %s88_s20 = ssub.s32 %s2300_s15, %s2358_s18  ;;  %p101_p0 = scmp.ne.s32.totalorder %s2296_s14, %s2292_s13 }
   0x6   : > { %p89_p1 = scmp.eq.s32.totalorder %s88_s20, 0  ;;  %p102_p2 = scmp.eq.s32.totalorder %s2354_s16, 1 }
   0x7   : > { %p107_p3 = scmp.ne.s32.totalorder %s2292_s13, %s2288_s12  ;;  %p108_p4 = scmp.eq.s32.totalorder %s1930_s17, 1 }
   0x8   : > { %s2369_s21 = scalar_select %p89_p1, %s2296_s14, %s91_s19  }
   0x9   : > { %p2371_p5 = por %p102_p2, %p101_p0  ;;  %p2375_p6 = por %p108_p4, %p107_p3 }
   0xa   : > { %p1933_p7 = scmp.ge.s32.totalorder %s2300_s15, 1  ;;  %p140_p8 = scmp.lt.s32.totalorder %s2300_s15, 3 }
   0xc   : > { %p141_p9 = pnand %p1933_p7, %p140_p8 }
   0xd   : > { %vm234_vm0 = vcmask (!%p141_p9), 64512   ;;  %vm237_vm1 = vcmask (!%p141_p9), 58368   ;;  %p164_p10 = scmp.lt.s32.totalorder (!%p141_p9), %s2354_s16, 1  ;;  %v2302_v0 = vmov (!%p141_p9), 0.0   ;;  %s2303_s29 = smov (!%p141_p9), 8   ;;  %vm1528_vm2 = vcmask (!%p141_p9), 1043456  }
   0xe   : > { %144 = sbr.rel (%p141_p9) target bundleno = 660 (0x294), region = 32  ;;  %235 = vst.msk [vmem:[#allocation2] sm:$0xff] (!%p141_p9), %vm234_vm0, %v2302_v0  ;;  %236 = vst.msk [vmem:[#allocation2 + $0x8] sm:$0xff] (!%p141_p9), %vm234_vm0, %v2302_v0  ;;  %s2304_s30 = smov (!%p141_p9), 16   ;;  %vm499_vm3 = vcmask (!%p141_p9), 130112   ;;  %vm628_vm4 = vcmask (!%p141_p9), 195712  }
   0xf   : > { %238 = vst.msk [vmem:[#allocation2 + $0x10] sm:$0x3] (!%p141_p9), %vm237_vm1, %v2302_v0  ;;  %241 = vst.msk [vmem:[#allocation2 + $0x28] sm:$0x3] (!%p141_p9), %vm237_vm1, %v2302_v0  ;;  %s2305_s4 = smov (!%p141_p9), 24   ;;  %s2306_s5 = smov (!%p141_p9), 32  }
  0x10   : > { %239 = vst.msk [vmem:[#allocation2 + $0x18] sm:$0xff] (!%p141_p9), %vm234_vm0, %v2302_v0  ;;  %240 = vst.msk [vmem:[#allocation2 + $0x20] sm:$0xff] (!%p141_p9), %vm234_vm0, %v2302_v0  ;;  %s2307_s6 = smov (!%p141_p9), 40   ;;  %s2308_s7 = smov (!%p141_p9), 48   ;;  %vm757_vm5 = vcmask (!%p141_p9), 261312   ;;  %vm886_vm6 = vcmask (!%p141_p9), 326912  }
  0x11   : > { %242 = vst.msk [vmem:[#allocation2 + $0x30] sm:$0xff] (!%p141_p9), %vm234_vm0, %v2302_v0  ;;  %243 = vst.msk [vmem:[#allocation2 + $0x38] sm:$0xff] (!%p141_p9), %vm234_vm0, %v2302_v0  ;;  %s2309_s17 = smov (!%p141_p9), 56   ;;  %s2310_s26 = smov (!%p141_p9), 64   ;;  %vm1015_vm7 = vcmask (!%p141_p9), 392512   ;;  %vm1145_vm8 = vcmask (!%p141_p9), 458112  }
  0x12   : > { %244 = vst.msk [vmem:[#allocation2 + $0x40] sm:$0x3] (!%p141_p9), %vm237_vm1, %v2302_v0  ;;  %247 = vst.msk [vmem:[#allocation2 + $0x58] sm:$0x3] (!%p141_p9), %vm237_vm1, %v2302_v0  ;;  %vm1274_vm9 = vcmask (!%p141_p9), 523712   ;;  %vm1403_vm10 = vcmask (!%p141_p9), 589312  }
  0x13   : > { %245 = vst.msk [vmem:[#allocation2 + $0x48] sm:$0xff] (!%p141_p9), %vm234_vm0, %v2302_v0  ;;  %246 = vst.msk [vmem:[#allocation2 + $0x50] sm:$0xff] (!%p141_p9), %vm234_vm0, %v2302_v0  ;;  %vm1479_vm11 = vcmask (!%p141_p9), 588800   ;;  %vm1821_vm12 = vcmask (!%p141_p9), 257024   ;;  %s2311_s19 = smov (!%p141_p9), [#allocation4]  }
  0x14   : > { %248 = vst.msk [vmem:[#allocation2 + $0x60] sm:$0xff] (!%p141_p9), %vm234_vm0, %v2302_v0  ;;  %249 = vst.msk [vmem:[#allocation2 + $0x68] sm:$0xff] (!%p141_p9), %vm234_vm0, %v2302_v0  ;;  %s2242_s20 = sshll.u32 (!%p141_p9), %s2311_s19, 4  ;;  %s2243_s20 = int_to_ptr.vmem [resolvable:$false] %s2242_s20 }
  0x15   : > { %250 = vst.msk [vmem:[#allocation2 + $0x70] sm:$0x3] %vm237_vm1, %v2302_v0  ;;  %253 = vst.msk [vmem:[#allocation2 + $0x88] sm:$0x3] %vm237_vm1, %v2302_v0  ;;  %s165_s24 = scalar_select %p164_p10, %s2354_s16, 1  ;;  %v387_v11 = vld [vmem:[#allocation2 + $0x1] sm:$0xff] }
  0x16   : > { %251 = vst.msk [vmem:[#allocation2 + $0x78] sm:$0xff] %vm234_vm0, %v2302_v0  ;;  %252 = vst.msk [vmem:[#allocation2 + $0x80] sm:$0xff] %vm234_vm0, %v2302_v0  ;;  %v388_v12 = vld [vmem:[#allocation2 + $0x9] sm:$0xff]  ;;  %v323_v37 = vld [vmem:[#allocation2] sm:$0xff] }
  0x17   : > { %254 = vst.msk [vmem:[#allocation2 + $0x90] sm:$0xff] %vm234_vm0, %v2302_v0  ;;  %255 = vst.msk [vmem:[#allocation2 + $0x98] sm:$0xff] %vm234_vm0, %v2302_v0  ;;  %s1996_s25 = sshll.u32 %s165_s24, 7  ;;  %v516_v13 = vld [vmem:[#allocation2 + $0x2] sm:$0xff]  ;;  %v419_v18 = vpack.c.bf16 %v388_v12, %v387_v11  ;;  %v517_v19 = vld [vmem:[#allocation2 + $0xa] sm:$0xff]  ;;  %s2244_s24 = scalar_lea.vmem %s2243_s20, 4096 }
  0x18   : > { %256 = vst.msk [vmem:[#allocation2 + $0xa0] sm:$0x3] %vm237_vm1, %v2302_v0  ;;  %259 = vst.msk [vmem:[#allocation2 + $0xb8] sm:$0x3] %vm237_vm1, %v2302_v0  ;;  %s2442_s28 = scalar_lea.vmem %s3121_s0, %s1996_s25  ;;  %v548_v25 = vpack.c.bf16 %v517_v19, %v516_v13  ;;  %v324_v36 = vld [vmem:[#allocation2 + $0x8] sm:$0xff] }
  0x19   : > { %257 = vst.msk [vmem:[#allocation2 + $0xa8] sm:$0xff] %vm234_vm0, %v2302_v0  ;;  %258 = vst.msk [vmem:[#allocation2 + $0xb0] sm:$0xff] %vm234_vm0, %v2302_v0  ;;  %v2031_v1 = vld [vmem:[%s2442_s28] sm:$0xff]   ;;  %v2100_v3 = vld [vmem:[%s2442_s28 + $0x38] sm:$0xff]   ;;  %451 = vrot.lane.b32.xlu0 %v419_v18, %s2303_s29  ;;  %v355_v42 = vpack.c.bf16 %v324_v36, %v323_v37 }
  0x1a   : > { %260 = vst.msk [vmem:[#allocation2 + $0xc0] sm:$0xff] %vm234_vm0, %v2302_v0  ;;  %261 = vst.msk [vmem:[#allocation2 + $0xc8] sm:$0xff] %vm234_vm0, %v2302_v0  ;;  %v2101_v2 = vld [vmem:[%s2442_s28 + $0x40] sm:$0xff]   ;;  %v2032_v4 = vunpack.c.l.bf16 %v2031_v1  ;;  %v2033_v5 = vunpack.c.h.bf16 %v2031_v1  ;;  %v2094_v8 = vld [vmem:[%s2442_s28 + $0x8] sm:$0xff]   ;;  %v2060_v14 = vunpack.c.l.bf16 %v2100_v3  ;;  %v2061_v15 = vunpack.c.h.bf16 %v2100_v3 }
  0x1b   : > { %262 = vst.msk [vmem:[#allocation2 + $0xd0] sm:$0x3] %vm237_vm1, %v2302_v0  ;;  %265 = vst.msk [vmem:[#allocation2 + $0xe8] sm:$0x3] %vm237_vm1, %v2302_v0  ;;  %v2064_v6 = vunpack.c.l.bf16 %v2101_v2  ;;  %v2065_v7 = vunpack.c.h.bf16 %v2101_v2  ;;  %v2102_v9 = vld [vmem:[%s2442_s28 + $0x48] sm:$0xff]   ;;  %v2095_v10 = vld [vmem:[%s2442_s28 + $0x10] sm:$0xff]   ;;  %v2036_v16 = vunpack.c.l.bf16 %v2094_v8  ;;  %v2037_v17 = vunpack.c.h.bf16 %v2094_v8 }
  0x1c   : > { %263 = vst.msk [vmem:[#allocation2 + $0xd8] sm:$0xff] %vm234_vm0, %v2302_v0  ;;  %264 = vst.msk [vmem:[#allocation2 + $0xe0] sm:$0xff] %vm234_vm0, %v2302_v0  ;;  %v2068_v20 = vunpack.c.l.bf16 %v2102_v9  ;;  %v2069_v21 = vunpack.c.h.bf16 %v2102_v9  ;;  %v2040_v22 = vunpack.c.l.bf16 %v2095_v10  ;;  %v2103_v23 = vld [vmem:[%s2442_s28 + $0x50] sm:$0xff]   ;;  %v2096_v24 = vld [vmem:[%s2442_s28 + $0x18] sm:$0xff]   ;;  %v2041_v26 = vunpack.c.h.bf16 %v2095_v10 }
  0x1d   : > { %266 = vst.msk [vmem:[#allocation2 + $0xf0] sm:$0xff] %vm234_vm0, %v2302_v0  ;;  %267 = vst.msk [vmem:[#allocation2 + $0xf8] sm:$0xff] %vm234_vm0, %v2302_v0  ;;  %v2072_v27 = vunpack.c.l.bf16 %v2103_v23  ;;  %v2073_v28 = vunpack.c.h.bf16 %v2103_v23  ;;  %v2104_v29 = vld [vmem:[%s2442_s28 + $0x58] sm:$0xff]   ;;  %v2097_v30 = vld [vmem:[%s2442_s28 + $0x20] sm:$0xff]   ;;  %v2044_v32 = vunpack.c.l.bf16 %v2096_v24  ;;  %v2045_v33 = vunpack.c.h.bf16 %v2096_v24  ;;  %580 = vrot.lane.b32.xlu0 %v548_v25, %s2304_s30 }
  0x1e   : > { %268 = vst.msk [vmem:[#allocation2 + $0x100] sm:$0x3] %vm237_vm1, %v2302_v0  ;;  %271 = vst.msk [vmem:[#allocation2 + $0x118] sm:$0x3] %vm237_vm1, %v2302_v0  ;;  %v2105_v31 = vld [vmem:[%s2442_s28 + $0x60] sm:$0xff]   ;;  %v2076_v34 = vunpack.c.l.bf16 %v2104_v29  ;;  %v2077_v35 = vunpack.c.h.bf16 %v2104_v29  ;;  %v2048_v38 = vunpack.c.l.bf16 %v2097_v30  ;;  %v2049_v39 = vunpack.c.h.bf16 %v2097_v30 }
  0x1f   : > { %269 = vst.msk [vmem:[#allocation2 + $0x108] sm:$0xff] %vm234_vm0, %v2302_v0  ;;  %270 = vst.msk [vmem:[#allocation2 + $0x110] sm:$0xff] %vm234_vm0, %v2302_v0  ;;  %v2080_v40 = vunpack.c.l.bf16 %v2105_v31  ;;  %v2081_v41 = vunpack.c.h.bf16 %v2105_v31 }
  0x20   : > { %272 = vst.msk [vmem:[#allocation2 + $0x120] sm:$0xff] %vm234_vm0, %v2302_v0  ;;  %273 = vst.msk [vmem:[#allocation2 + $0x128] sm:$0xff] %vm234_vm0, %v2302_v0 }
  0x21   : > { %274 = vst.msk [vmem:[#allocation2 + $0x130] sm:$0x3] %vm237_vm1, %v2302_v0  ;;  %277 = vst.msk [vmem:[#allocation2 + $0x148] sm:$0x3] %vm237_vm1, %v2302_v0 }
  0x22   : > { %275 = vst.msk [vmem:[#allocation2 + $0x138] sm:$0xff] %vm234_vm0, %v2302_v0  ;;  %276 = vst.msk [vmem:[#allocation2 + $0x140] sm:$0xff] %vm234_vm0, %v2302_v0 }
  0x23   : > { %278 = vst.msk [vmem:[#allocation2 + $0x150] sm:$0xff] %vm234_vm0, %v2302_v0  ;;  %279 = vst.msk [vmem:[#allocation2 + $0x158] sm:$0xff] %vm234_vm0, %v2302_v0 }
  0x24   : > { %280 = vst.msk [vmem:[#allocation2 + $0x160] sm:$0x3] %vm237_vm1, %v2302_v0  ;;  %283 = vst.msk [vmem:[#allocation2 + $0x178] sm:$0x3] %vm237_vm1, %v2302_v0 }
  0x25   : > { %281 = vst.msk [vmem:[#allocation2 + $0x168] sm:$0xff] %vm234_vm0, %v2302_v0  ;;  %282 = vst.msk [vmem:[#allocation2 + $0x170] sm:$0xff] %vm234_vm0, %v2302_v0 }
  0x26   : > { %284 = vst.msk [vmem:[#allocation2 + $0x180] sm:$0xff] %vm234_vm0, %v2302_v0  ;;  %285 = vst.msk [vmem:[#allocation2 + $0x188] sm:$0xff] %vm234_vm0, %v2302_v0 }
  0x27   : > { %286 = vst.msk [vmem:[#allocation2 + $0x190] sm:$0x3] %vm237_vm1, %v2302_v0  ;;  %289 = vst.msk [vmem:[#allocation2 + $0x1a8] sm:$0x3] %vm237_vm1, %v2302_v0 }
  0x28   : > { %287 = vst.msk [vmem:[#allocation2 + $0x198] sm:$0xff] %vm234_vm0, %v2302_v0  ;;  %288 = vst.msk [vmem:[#allocation2 + $0x1a0] sm:$0xff] %vm234_vm0, %v2302_v0 }
  0x29   : > { %291 = vst.msk [vmem:[#allocation2 + $0x19] sm:$0xff] %vm234_vm0, %v2032_v4  ;;  %292 = vst.msk [vmem:[#allocation2 + $0x21] sm:$0xff] %vm234_vm0, %v2033_v5 }
  0x2a   : > { %307 = vst.msk [vmem:[#allocation2 + $0xd9] sm:$0xff] %vm234_vm0, %v2064_v6  ;;  %308 = vst.msk [vmem:[#allocation2 + $0xe1] sm:$0xff] %vm234_vm0, %v2065_v7 }
  0x2b   : > { %305 = vst.msk [vmem:[#allocation2 + $0xc1] sm:$0xff] %vm234_vm0, %v2060_v14  ;;  %306 = vst.msk [vmem:[#allocation2 + $0xc9] sm:$0xff] %vm234_vm0, %v2061_v15 }
  0x2c   : > { %293 = vst.msk [vmem:[#allocation2 + $0x31] sm:$0xff] %vm234_vm0, %v2036_v16  ;;  %294 = vst.msk [vmem:[#allocation2 + $0x39] sm:$0xff] %vm234_vm0, %v2037_v17 }
  0x2d   : > { %309 = vst.msk [vmem:[#allocation2 + $0xf1] sm:$0xff] %vm234_vm0, %v2068_v20  ;;  %310 = vst.msk [vmem:[#allocation2 + $0xf9] sm:$0xff] %vm234_vm0, %v2069_v21  ;;  %v2098_v21 = vld [vmem:[%s2442_s28 + $0x28] sm:$0xff]  }
  0x2e   : > { %295 = vst.msk [vmem:[#allocation2 + $0x49] sm:$0xff] %vm234_vm0, %v2040_v22  ;;  %296 = vst.msk [vmem:[#allocation2 + $0x51] sm:$0xff] %vm234_vm0, %v2041_v26  ;;  %v2106_v22 = vld [vmem:[%s2442_s28 + $0x68] sm:$0xff]   ;;  %v2052_v23 = vunpack.c.l.bf16 %v2098_v21  ;;  %v2053_v24 = vunpack.c.h.bf16 %v2098_v21 }
  0x2f   : > { %311 = vst.msk [vmem:[#allocation2 + $0x109] sm:$0xff] %vm234_vm0, %v2072_v27  ;;  %312 = vst.msk [vmem:[#allocation2 + $0x111] sm:$0xff] %vm234_vm0, %v2073_v28  ;;  %v2084_v25 = vunpack.c.l.bf16 %v2106_v22  ;;  %v2085_v26 = vunpack.c.h.bf16 %v2106_v22 }
  0x30   : > { %297 = vst.msk [vmem:[#allocation2 + $0x61] sm:$0xff] %vm234_vm0, %v2044_v32  ;;  %298 = vst.msk [vmem:[#allocation2 + $0x69] sm:$0xff] %vm234_vm0, %v2045_v33  ;;  %v389_v43 = vld [vmem:[#allocation2 + $0x19] sm:$0xff]  ;;  %v390_v44 = vld [vmem:[#allocation2 + $0x21] sm:$0xff] }
  0x31   : > { %313 = vst.msk [vmem:[#allocation2 + $0x121] sm:$0xff] %vm234_vm0, %v2076_v34  ;;  %314 = vst.msk [vmem:[#allocation2 + $0x129] sm:$0xff] %vm234_vm0, %v2077_v35  ;;  %v405_v45 = vld [vmem:[#allocation2 + $0xd9] sm:$0xff]  ;;  %v420_v46 = vpack.c.bf16 %v390_v44, %v389_v43  ;;  %v406_v47 = vld [vmem:[#allocation2 + $0xe1] sm:$0xff] }
  0x32   : > { %299 = vst.msk [vmem:[#allocation2 + $0x79] sm:$0xff] %vm234_vm0, %v2048_v38  ;;  %300 = vst.msk [vmem:[#allocation2 + $0x81] sm:$0xff] %vm234_vm0, %v2049_v39  ;;  %v403_v48 = vld [vmem:[#allocation2 + $0xc1] sm:$0xff]  ;;  %v404_v49 = vld [vmem:[#allocation2 + $0xc9] sm:$0xff]  ;;  %v2481_v52 = vpack.c.bf16 %v406_v47, %v405_v45 }
  0x33   : > { %315 = vst.msk [vmem:[#allocation2 + $0x139] sm:$0xff] %vm234_vm0, %v2080_v40  ;;  %316 = vst.msk [vmem:[#allocation2 + $0x141] sm:$0xff] %vm234_vm0, %v2081_v41  ;;  %v427_v50 = vpack.c.bf16 %v404_v49, %v403_v48  ;;  %v518_v51 = vld [vmem:[#allocation2 + $0x1a] sm:$0xff]  ;;  %453 = vrot.lane.b32.xlu1 %v420_v46, %s2303_s29  ;;  %v532_v53 = vld [vmem:[#allocation2 + $0xc2] sm:$0xff] }
  0x34   : > { %371 = vst.msk [vmem:[#allocation3] sm:$0xff] %vm234_vm0, %v355_v42  ;;  %v533_v54 = vld [vmem:[#allocation2 + $0xca] sm:$0xff]  ;;  %v519_v55 = vld [vmem:[#allocation2 + $0x22] sm:$0xff]  ;;  %v645_v57 = vld [vmem:[#allocation2 + $0x18] sm:$0xff] }
  0x35   : > { %467 = vrot.lane.b32.xlu0 %v427_v50, %s2303_s29  ;;  %v2484_v56 = vpack.c.bf16 %v519_v55, %v518_v51  ;;  %v646_v58 = vld [vmem:[#allocation2 + $0x20] sm:$0xff]  ;;  %v661_v59 = vld [vmem:[#allocation2 + $0xd8] sm:$0xff]  ;;  %v647_v62 = vld [vmem:[#allocation2 + $0x30] sm:$0xff]  ;;  %v556_v4 = vpack.c.bf16 %v533_v54, %v532_v53  ;;  %301 = vst.msk [vmem:[#allocation2 + $0x91] sm:$0xff] %vm234_vm0, %v2052_v23 }
  0x36   : > { %v677_v60 = vpack.c.bf16 %v646_v58, %v645_v57  ;;  %v662_v61 = vld [vmem:[#allocation2 + $0xe0] sm:$0xff]  ;;  %v648_v63 = vld [vmem:[#allocation2 + $0x38] sm:$0xff]  ;;  %v663_v2 = vld [vmem:[#allocation2 + $0xf0] sm:$0xff]  ;;  %302 = vst.msk [vmem:[#allocation2 + $0x99] sm:$0xff] %vm234_vm0, %v2053_v24 }
  0x37   : > { %v685_v0 = vpack.c.bf16 %v662_v61, %v661_v59  ;;  %v2486_v1 = vpack.c.bf16 %v648_v63, %v647_v62  ;;  %v664_v3 = vld [vmem:[#allocation2 + $0xf8] sm:$0xff]  ;;  %469 = vrot.lane.b32.xlu1 %v2481_v52, %s2303_s29  ;;  %v535_v7 = vld [vmem:[#allocation2 + $0xe2] sm:$0xff]  ;;  %v1036_v9 = vld [vmem:[#allocation2 + $0x50] sm:$0xff]  ;;  %317 = vst.msk [vmem:[#allocation2 + $0x151] sm:$0xff] %vm234_vm0, %v2084_v25 }
  0x38   : > { %v2490_v5 = vpack.c.bf16 %v664_v3, %v663_v2  ;;  %372 = vst.msk [vmem:[#allocation3 + $0x8] sm:$0xff] %vm234_vm0, %v677_v60  ;;  %v534_v6 = vld [vmem:[#allocation2 + $0xda] sm:$0xff]  ;;  %v1035_v8 = vld [vmem:[#allocation2 + $0x48] sm:$0xff]  ;;  %v1052_v12 = vld [vmem:[#allocation2 + $0x110] sm:$0xff] }
  0x39   : > { %582 = vrot.lane.b32.xlu0 %v2484_v56, %s2304_s30  ;;  %380 = vst.msk [vmem:[#allocation3 + $0x48] sm:$0xff] %vm234_vm0, %v685_v0  ;;  %373 = vst.msk [vmem:[#allocation3 + $0x10] sm:$0xff] %vm234_vm0, %v2486_v1  ;;  %v2500_v10 = vpack.c.bf16 %v1036_v9, %v1035_v8  ;;  %v1051_v11 = vld [vmem:[#allocation2 + $0x108] sm:$0xff]  ;;  %v557_v13 = vpack.c.bf16 %v535_v7, %v534_v6  ;;  %v776_v15 = vld [vmem:[#allocation2 + $0x31] sm:$0xff] }
  0x3a   : > { %381 = vst.msk [vmem:[#allocation3 + $0x50] sm:$0xff] %vm234_vm0, %v2490_v5  ;;  %v2503_v14 = vpack.c.bf16 %v1052_v12, %v1051_v11  ;;  %v777_v16 = vld [vmem:[#allocation2 + $0x39] sm:$0xff]  ;;  %v340_v19 = vld [vmem:[#allocation2 + $0xc8] sm:$0xff]  ;;  %v792_v27 = vld [vmem:[#allocation2 + $0xf1] sm:$0xff] }
  0x3b   : > { %596 = vrot.lane.b32.xlu1 %v556_v4, %s2304_s30  ;;  %374 = vst.msk [vmem:[#allocation3 + $0x18] sm:$0xff] %vm234_vm0, %v2500_v10  ;;  %v2515_v17 = vpack.c.bf16 %v777_v16, %v776_v15  ;;  %v339_v18 = vld [vmem:[#allocation2 + $0xc0] sm:$0xff]  ;;  %v905_v29 = vld [vmem:[#allocation2 + $0x32] sm:$0xff]  ;;  %318 = vst.msk [vmem:[#allocation2 + $0x159] sm:$0xff] %vm234_vm0, %v2085_v26 }
  0x3c   : > { %382 = vst.msk [vmem:[#allocation3 + $0x58] sm:$0xff] %vm234_vm0, %v2503_v14  ;;  %v2517_v20 = vpack.c.bf16 %v340_v19, %v339_v18  ;;  %v793_v28 = vld [vmem:[#allocation2 + $0xf9] sm:$0xff]  ;;  %v2099_v35 = vld [vmem:[%s2442_s28 + $0x30] sm:$0xff]   ;;  %v2234_v51 = vld [vmem:[%s3122_s1 + $0x8] sm:$0xff]  }
  0x3d   : > { %709 = vrot.lane.b32.xlu0 %v677_v60, %s2305_s4  ;;  %v906_v30 = vld [vmem:[#allocation2 + $0x3a] sm:$0xff]  ;;  %v2533_v31 = vpack.c.bf16 %v793_v28, %v792_v27  ;;  %v921_v33 = vld [vmem:[#allocation2 + $0xf2] sm:$0xff]  ;;  %v2056_v39 = vunpack.c.l.bf16 %v2099_v35  ;;  %v2057_v40 = vunpack.c.h.bf16 %v2099_v35  ;;  %v1164_v49 = vld [vmem:[#allocation2 + $0x49] sm:$0xff] }
  0x3e   : > { %379 = vst.msk [vmem:[#allocation3 + $0x40] sm:$0xff] %vm234_vm0, %v2517_v20  ;;  %v2537_v32 = vpack.c.bf16 %v906_v30, %v905_v29  ;;  %v922_v34 = vld [vmem:[#allocation2 + $0xfa] sm:$0xff]  ;;  %v655_v36 = vld [vmem:[#allocation2 + $0x90] sm:$0xff]  ;;  %v652_v9 = vld [vmem:[#allocation2 + $0x68] sm:$0xff] }
  0x3f   : > { %598 = vrot.lane.b32.xlu1 %v557_v13, %s2304_s30  ;;  %v656_v37 = vld [vmem:[#allocation2 + $0x98] sm:$0xff]  ;;  %v671_v38 = vld [vmem:[#allocation2 + $0x150] sm:$0xff]  ;;  %303 = vst.msk [vmem:[#allocation2 + $0xa9] sm:$0xff] %vm234_vm0, %v2056_v39  ;;  %304 = vst.msk [vmem:[#allocation2 + $0xb1] sm:$0xff] %vm234_vm0, %v2057_v40  ;;  %v2551_v44 = vpack.c.bf16 %v922_v34, %v921_v33 }
  0x40   : > { %v2544_v41 = vpack.c.bf16 %v656_v37, %v655_v36  ;;  %v2107_v45 = vld [vmem:[%s2442_s28 + $0x70] sm:$0xff]   ;;  %v2233_v48 = vld [vmem:[%s3122_s1] sm:$0xff]   ;;  %v2236_v62 = vld [vmem:[%s3122_s1 + $0x18] sm:$0xff]  }
  0x41   : > { %711 = vrot.lane.b32.xlu0 %v2486_v1, %s2305_s4  ;;  %v2089_v47 = vunpack.c.h.bf16 %v2107_v45  ;;  %2130 = vmatprep.subr.bf16.mxu0 %v2233_v48  ;;  %v1165_v50 = vld [vmem:[#allocation2 + $0x51] sm:$0xff]  ;;  %v1180_v60 = vld [vmem:[#allocation2 + $0x109] sm:$0xff]  ;;  %v2237_v2 = vld [vmem:[%s3122_s1 + $0x20] ss:$0 sps:$4 sm:$0xff]  }
  0x42   : > { %v672_v42 = vld [vmem:[#allocation2 + $0x158] sm:$0xff]  ;;  %377 = vst.msk [vmem:[#allocation3 + $0x30] sm:$0xff] %vm234_vm0, %v2544_v41  ;;  %2131 = vmatpush3.bf16.msra.mxu0 %v2233_v48  ;;  %2172 = vmatprep.subr.bf16.mxu1 %v2233_v48  ;;  %v2578_v55 = vpack.c.bf16 %v1165_v50, %v1164_v49  ;;  %v1530_v3 = vsel %vm1528_vm2, %v2237_v2, 0  ;;  %v651_v8 = vld [vmem:[#allocation2 + $0x60] sm:$0xff]  ;;  %v781_v19 = vld [vmem:[#allocation2 + $0x69] sm:$0xff] }
  0x43   : > { %725 = vrot.lane.b32.xlu1 %v685_v0, %s2305_s4  ;;  %v2546_v43 = vpack.c.bf16 %v672_v42, %v671_v38  ;;  %320 = vst.msk [vmem:[#allocation2 + $0x171] sm:$0xff] %vm234_vm0, %v2089_v47  ;;  %2177 = vmatpush3.bf16.msra.mxu1 %v2233_v48  ;;  %v1181_v61 = vld [vmem:[#allocation2 + $0x111] sm:$0xff]  ;;  %v680_v15 = vpack.c.bf16 %v652_v9, %v651_v8  ;;  %v667_v16 = vld [vmem:[#allocation2 + $0x120] sm:$0xff]  ;;  %v797_v23 = vld [vmem:[#allocation2 + $0x129] sm:$0xff] }
  0x44   : > { %2132 = vmatprep.subr.bf16.mxu0 %v2234_v51  ;;  %2173 = vmatprep.subr.bf16.mxu1 %v2234_v51  ;;  %v1203_v63 = vpack.c.bf16 %v1181_v61, %v1180_v60  ;;  %v1293_v0 = vld [vmem:[#allocation2 + $0x4a] sm:$0xff]  ;;  %v1310_v6 = vld [vmem:[#allocation2 + $0x112] sm:$0xff]  ;;  %v780_v18 = vld [vmem:[#allocation2 + $0x61] sm:$0xff] }
  0x45   : > { %838 = vrot.lane.b32.xlu0 %v420_v46, %s2306_s5  ;;  %v2088_v46 = vunpack.c.l.bf16 %v2107_v45  ;;  %385 = vst.msk [vmem:[#allocation3 + $0x70] sm:$0xff] %vm234_vm0, %v2546_v43  ;;  %v2108_v11 = vld [vmem:[%s2442_s28 + $0x78] sm:$0xff]   ;;  %v796_v22 = vld [vmem:[#allocation2 + $0x121] sm:$0xff]  ;;  %v910_v25 = vld [vmem:[#allocation2 + $0x6a] sm:$0xff]  ;;  %s161_s28 = sand.u32 1, %s2292_s13  }
  0x46   : > { %v1044_v53 = vld [vmem:[#allocation2 + $0xb0] sm:$0xff]  ;;  %2133 = vmatpush3.bf16.msra.mxu0 %v2234_v51  ;;  %v2092_v12 = vunpack.c.l.bf16 %v2108_v11  ;;  %v909_v24 = vld [vmem:[#allocation2 + $0x62] sm:$0xff]  ;;  %v2637_v26 = vpack.c.bf16 %v797_v23, %v796_v22  ;;  %v1039_v29 = vld [vmem:[#allocation2 + $0x78] sm:$0xff] }
  0x47   : > { %727 = vrot.lane.b32.xlu1 %v2490_v5, %s2305_s4  ;;  %319 = vst.msk [vmem:[#allocation2 + $0x169] sm:$0xff] %vm234_vm0, %v2088_v46  ;;  %2178 = vmatpush3.bf16.msra.mxu1 %v2234_v51  ;;  %v925_v27 = vld [vmem:[#allocation2 + $0x122] sm:$0xff]  ;;  %v926_v28 = vld [vmem:[#allocation2 + $0x12a] sm:$0xff]  ;;  %v1055_v33 = vld [vmem:[#allocation2 + $0x138] sm:$0xff] }
  0x48   : > { %321 = vst.msk [vmem:[#allocation2 + $0x181] sm:$0xff] %vm234_vm0, %v2092_v12  ;;  %v1040_v30 = vld [vmem:[#allocation2 + $0x80] sm:$0xff]  ;;  %v332_v42 = vld [vmem:[#allocation2 + $0x68] sm:$0xff]  ;;  %v349_v60 = vld [vmem:[#allocation2 + $0x138] sm:$0xff] }
  0x49   : > { %840 = vrot.lane.b32.xlu0 %v2515_v17, %s2306_s5  ;;  %v1056_v34 = vld [vmem:[#allocation2 + $0x140] sm:$0xff]  ;;  %v348_v46 = vld [vmem:[#allocation2 + $0x128] sm:$0xff] }
  0x4a   : > { %v1168_v35 = vld [vmem:[#allocation2 + $0x79] sm:$0xff]  ;;  %v1169_v36 = vld [vmem:[#allocation2 + $0x81] sm:$0xff]  ;;  %v2657_v37 = vpack.c.bf16 %v1056_v34, %v1055_v33 }
  0x4b   : > { %854 = vrot.lane.b32.xlu1 %v2481_v52, %s2306_s5  ;;  %v1043_v52 = vld [vmem:[#allocation2 + $0xa8] sm:$0xff]  ;;  %v2661_v38 = vpack.c.bf16 %v1169_v36, %v1168_v35  ;;  %v331_v40 = vld [vmem:[#allocation2 + $0x60] sm:$0xff]  ;;  %v929_v34 = vld [vmem:[#allocation2 + $0x152] sm:$0xff] }
  0x4c   : > { %v2572_v54 = vpack.c.bf16 %v1044_v53, %v1043_v52  ;;  %v359_v45 = vpack.c.bf16 %v332_v42, %v331_v40  ;;  %v1184_v47 = vld [vmem:[#allocation2 + $0x139] sm:$0xff]  ;;  %v1185_v48 = vld [vmem:[#allocation2 + $0x141] sm:$0xff] }
  0x4d   : > { %967 = vrot.lane.b32.xlu0 %v2484_v56, %s2307_s6  ;;  %v2235_v56 = vld [vmem:[%s3122_s1 + $0x10] sm:$0xff]   ;;  %v2673_v51 = vpack.c.bf16 %v1185_v48, %v1184_v47  ;;  %v1297_v53 = vld [vmem:[#allocation2 + $0x7a] sm:$0xff] }
  0x4e   : > { %378 = vst.msk [vmem:[#allocation3 + $0x38] sm:$0xff] %vm234_vm0, %v2572_v54  ;;  %v1059_v57 = vld [vmem:[#allocation2 + $0x168] sm:$0xff]  ;;  %v1060_v58 = vld [vmem:[#allocation2 + $0x170] sm:$0xff]  ;;  %2134 = vmatprep.subr.bf16.mxu0 %v2235_v56  ;;  %2174 = vmatprep.subr.bf16.mxu1 %v2235_v56  ;;  %375 = vst.msk [vmem:[#allocation3 + $0x20] sm:$0xff] %vm234_vm0, %v359_v45 }
  0x4f   : > { %856 = vrot.lane.b32.xlu1 %v2533_v31, %s2306_s5  ;;  %v2585_v59 = vpack.c.bf16 %v1060_v58, %v1059_v57  ;;  %2135 = vmatpush3.bf16.msra.mxu0 %v2235_v56  ;;  %v333_v57 = vld [vmem:[#allocation2 + $0x78] sm:$0xff]  ;;  %v334_v58 = vld [vmem:[#allocation2 + $0x80] sm:$0xff] }
  0x50   : > { %2179 = vmatpush3.bf16.msra.mxu1 %v2235_v56  ;;  %2136 = vmatprep.subr.bf16.mxu0 %v2236_v62  ;;  %v360_v61 = vpack.c.bf16 %v334_v58, %v333_v57  ;;  %v930_v35 = vld [vmem:[#allocation2 + $0x15a] sm:$0xff]  ;;  %v1173_v45 = vld [vmem:[#allocation2 + $0xb1] sm:$0xff] }
  0x51   : > { %969 = vrot.lane.b32.xlu0 %v2537_v32, %s2307_s6  ;;  %386 = vst.msk [vmem:[#allocation3 + $0x78] sm:$0xff] %vm234_vm0, %v2585_v59  ;;  %2175 = vmatprep.subr.bf16.mxu1 %v2236_v62  ;;  %v1301_v57 = vld [vmem:[#allocation2 + $0xaa] sm:$0xff]  ;;  %v1302_v58 = vld [vmem:[#allocation2 + $0xb2] sm:$0xff] }
  0x52   : > { %376 = vst.msk [vmem:[#allocation3 + $0x28] sm:$0xff] %vm234_vm0, %v360_v61 }
  0x53   : > { %983 = vrot.lane.b32.xlu1 %v557_v13, %s2307_s6  ;;  %2137 = vmatpush3.bf16.msra.mxu0 %v2236_v62  ;;  %v2093_v13 = vunpack.c.h.bf16 %v2108_v11 }
  0x54   : > { %2180 = vmatpush3.bf16.msra.mxu1 %v2236_v62  ;;  %2182 = vmatprep.subr.msk.bf16.mxu0 %vm1528_vm2, %v2237_v2  ;;  %v350_v62 = vld [vmem:[#allocation2 + $0x140] sm:$0xff] }
  0x55   : > { %1097 = vrot.lane.b32.xlu0 %v2486_v1, %s2308_s7  ;;  %v1294_v1 = vld [vmem:[#allocation2 + $0x52] sm:$0xff]  ;;  %2183 = vmatprep.subr.msk.bf16.mxu1 %vm1528_vm2, %v2237_v2  ;;  %322 = vst.msk [vmem:[#allocation2 + $0x189] sm:$0xff] %vm234_vm0, %v2093_v13 }
  0x56   : > { %v1324_v4 = vpack.c.bf16 %v1294_v1, %v1293_v0  ;;  %v368_v0 = vpack.c.bf16 %v350_v62, %v349_v60  ;;  %v2800_v62 = vpack.c.bf16 %v1302_v58, %v1301_v57  ;;  %v1305_v58 = vld [vmem:[#allocation2 + $0xda] sm:$0xff] }
  0x57   : > { %985 = vrot.lane.b32.xlu1 %v2551_v44, %s2307_s6  ;;  %2139 = vmatpush3.bf16.msra.mxu0 %v1530_v3 }
  0x58   : > { %2181 = vmatpush3.bf16.msra.mxu1 %v1530_v3  ;;  %384 = vst.msk [vmem:[#allocation3 + $0x68] sm:$0xff] %vm234_vm0, %v368_v0  ;;  %v1313_v3 = vld [vmem:[#allocation2 + $0x13a] sm:$0xff] }
  0x59   : > { %1099 = vrot.lane.b32.xlu0 %v2500_v10, %s2308_s7 }
  0x5b   : > { %1113 = vrot.lane.b32.xlu1 %v2490_v5, %s2308_s7  ;;  %v1309_v5 = vld [vmem:[#allocation2 + $0x10a] sm:$0xff] }
  0x5c   : > { %v1332_v7 = vpack.c.bf16 %v1310_v6, %v1309_v5 }
  0x5d   : > { %1226 = vrot.lane.b32.xlu0 %v2515_v17, %s2309_s17 }
  0x5f   : > { %1115 = vrot.lane.b32.xlu1 %v2503_v14, %s2308_s7 }
  0x61   : > { %1228 = vrot.lane.b32.xlu0 %v2578_v55, %s2309_s17 }
  0x63   : > { %1242 = vrot.lane.b32.xlu1 %v2533_v31, %s2309_s17 }
  0x65   : > { %1355 = vrot.lane.b32.xlu0 %v2537_v32, %s2310_s26 }
  0x67   : > { %1244 = vrot.lane.b32.xlu1 %v1203_v63, %s2309_s17 }
  0x69   : > { %455 = vrot.lane.b32.xlu0 %v2515_v17, %s2303_s29  ;;  %v668_v17 = vld [vmem:[#allocation2 + $0x128] sm:$0xff] }
  0x6a   : > { %v688_v21 = vpack.c.bf16 %v668_v17, %v667_v16 }
  0x6b   : > { %1371 = vrot.lane.b32.xlu1 %v2551_v44, %s2310_s26 }
  0x6d   : > { %1357 = vrot.lane.b32.xlu0 %v1324_v4, %s2310_s26 }
  0x6f   : > { %471 = vrot.lane.b32.xlu1 %v2533_v31, %s2303_s29  ;;  %v2647_v31 = vpack.c.bf16 %v926_v28, %v925_v27  ;;  %v913_v27 = vld [vmem:[#allocation2 + $0x92] sm:$0xff]  ;;  %v914_v28 = vld [vmem:[#allocation2 + $0x9a] sm:$0xff] }
  0x71   : > { %457 = vrot.lane.b32.xlu0 %v2578_v55, %s2303_s29 }
  0x73   : > { %1373 = vrot.lane.b32.xlu1 %v1332_v7, %s2310_s26 }
  0x75   : > { %584 = vrot.lane.b32.xlu0 %v2537_v32, %s2304_s30  ;;  %v2650_v32 = vpack.c.bf16 %v1040_v30, %v1039_v29 }
  0x77   : > { %473 = vrot.lane.b32.xlu1 %v1203_v63, %s2303_s29 }
  0x79   : > { %586 = vrot.lane.b32.xlu0 %v1324_v4, %s2304_s30 }
  0x7b   : > { %600 = vrot.lane.b32.xlu1 %v2551_v44, %s2304_s30  ;;  %v347_v44 = vld [vmem:[#allocation2 + $0x120] sm:$0xff] }
  0x7c   : > { %v367_v49 = vpack.c.bf16 %v348_v46, %v347_v44  ;;  %v1172_v44 = vld [vmem:[#allocation2 + $0xa9] sm:$0xff] }
  0x7d   : > { %713 = vrot.lane.b32.xlu0 %v2500_v10, %s2305_s4  ;;  %v2631_v10 = vpack.c.bf16 %v781_v19, %v780_v18  ;;  %v784_v19 = vld [vmem:[#allocation2 + $0x91] sm:$0xff] }
  0x7e   : > { %383 = vst.msk [vmem:[#allocation3 + $0x60] sm:$0xff] %vm234_vm0, %v367_v49 }
  0x7f   : > { %602 = vrot.lane.b32.xlu1 %v1332_v7, %s2304_s30 }
  0x81   : > { %715 = vrot.lane.b32.xlu0 %v680_v15, %s2305_s4 }
  0x83   : > { %729 = vrot.lane.b32.xlu1 %v2503_v14, %s2305_s4  ;;  %v2640_v14 = vpack.c.bf16 %v910_v25, %v909_v24  ;;  %v800_v25 = vld [vmem:[#allocation2 + $0x151] sm:$0xff] }
  0x85   : > { %842 = vrot.lane.b32.xlu0 %v2578_v55, %s2306_s5  ;;  %v1298_v55 = vld [vmem:[#allocation2 + $0x82] sm:$0xff] }
  0x87   : > { %731 = vrot.lane.b32.xlu1 %v688_v21, %s2305_s4 }
  0x89   : > { %844 = vrot.lane.b32.xlu0 %v2631_v10, %s2306_s5 }
  0x8b   : > { %858 = vrot.lane.b32.xlu1 %v1203_v63, %s2306_s5  ;;  %v452_v39 = vpop.permute.xlu0 %451  ;;  %v2683_v63 = vpack.c.bf16 %v1298_v55, %v1297_v53 }
  0x8c   : > { %500 = vst.msk [vmem:[#allocation3] sm:$0xff] %vm499_vm3, %v452_v39 }
  0x8d   : > { %971 = vrot.lane.b32.xlu0 %v1324_v4, %s2307_s6  ;;  %v1314_v4 = vld [vmem:[#allocation2 + $0x142] sm:$0xff] }
  0x8f   : > { %860 = vrot.lane.b32.xlu1 %v2637_v26, %s2306_s5  ;;  %v581_v50 = vpop.permute.xlu0 %580 }
  0x90   : > { %629 = vst.msk [vmem:[#allocation3] sm:$0xff] %vm628_vm4, %v581_v50  ;;  %v1189_v50 = vld [vmem:[#allocation2 + $0x171] sm:$0xff] }
  0x91   : > { %973 = vrot.lane.b32.xlu0 %v2640_v14, %s2307_s6 }
  0x93   : > { %987 = vrot.lane.b32.xlu1 %v1332_v7, %s2307_s6  ;;  %v2697_v7 = vpack.c.bf16 %v1314_v4, %v1313_v3 }
  0x95   : > { %1101 = vrot.lane.b32.xlu0 %v680_v15, %s2308_s7 }
  0x97   : > { %989 = vrot.lane.b32.xlu1 %v2647_v31, %s2307_s6 }
  0x99   : > { %1103 = vrot.lane.b32.xlu0 %v2650_v32, %s2308_s7 }
  0x9b   : > { %1117 = vrot.lane.b32.xlu1 %v688_v21, %s2308_s7  ;;  %v785_v21 = vld [vmem:[#allocation2 + $0x99] sm:$0xff] }
  0x9c   : > { %v2731_v22 = vpack.c.bf16 %v785_v21, %v784_v19  ;;  %v788_v21 = vld [vmem:[#allocation2 + $0xc1] sm:$0xff] }
  0x9d   : > { %1230 = vrot.lane.b32.xlu0 %v2631_v10, %s2309_s17 }
  0x9f   : > { %1119 = vrot.lane.b32.xlu1 %v2657_v37, %s2308_s7 }
  0xa1   : > { %1232 = vrot.lane.b32.xlu0 %v2661_v38, %s2309_s17 }
  0xa3   : > { %1246 = vrot.lane.b32.xlu1 %v2637_v26, %s2309_s17 }
  0xa5   : > { %1359 = vrot.lane.b32.xlu0 %v2640_v14, %s2310_s26  ;;  %v454_v52 = vpop.permute.xlu1 %453 }
  0xa6   : > { %501 = vst.msk [vmem:[#allocation3 + $0x8] sm:$0xff] %vm499_vm3, %v454_v52 }
  0xa7   : > { %v468_v56 = vpop.permute.xlu0 %467  ;;  %1248 = vrot.lane.b32.xlu1 %v2673_v51, %s2309_s17 }
  0xa8   : > { %508 = vst.msk [vmem:[#allocation3 + $0x40] sm:$0xff] %vm499_vm3, %v468_v56 }
  0xa9   : > { %459 = vrot.lane.b32.xlu0 %v2631_v10, %s2303_s29  ;;  %v470_v1 = vpop.permute.xlu1 %469 }
  0xaa   : > { %509 = vst.msk [vmem:[#allocation3 + $0x48] sm:$0xff] %vm499_vm3, %v470_v1  ;;  %v1317_v1 = vld [vmem:[#allocation2 + $0x16a] sm:$0xff] }
  0xab   : > { %v583_v2 = vpop.permute.xlu0 %582  ;;  %1375 = vrot.lane.b32.xlu1 %v2647_v31, %s2310_s26 }
  0xac   : > { %630 = vst.msk [vmem:[#allocation3 + $0x8] sm:$0xff] %vm628_vm4, %v583_v2  ;;  %v1318_v2 = vld [vmem:[#allocation2 + $0x172] sm:$0xff] }
  0xad   : > { %1361 = vrot.lane.b32.xlu0 %v2683_v63, %s2310_s26  ;;  %v597_v5 = vpop.permute.xlu1 %596 }
  0xae   : > { %637 = vst.msk [vmem:[#allocation3 + $0x40] sm:$0xff] %vm628_vm4, %v597_v5 }
  0xaf   : > { %v710_v6 = vpop.permute.xlu0 %709  ;;  %475 = vrot.lane.b32.xlu1 %v2637_v26, %s2303_s29  ;;  %v801_v26 = vld [vmem:[#allocation2 + $0x159] sm:$0xff] }
  0xb0   : > { %758 = vst.msk [vmem:[#allocation3] sm:$0xff] %vm757_vm5, %v710_v6  ;;  %v2743_v30 = vpack.c.bf16 %v801_v26, %v800_v25  ;;  %v2813_v6 = vpack.c.bf16 %v1318_v2, %v1317_v1  ;;  %v804_v26 = vld [vmem:[#allocation2 + $0x181] sm:$0xff] }
  0xb1   : > { %461 = vrot.lane.b32.xlu0 %v2661_v38, %s2303_s29  ;;  %v599_v8 = vpop.permute.xlu1 %598 }
  0xb2   : > { %638 = vst.msk [vmem:[#allocation3 + $0x48] sm:$0xff] %vm628_vm4, %v599_v8 }
  0xb3   : > { %v712_v9 = vpop.permute.xlu0 %711  ;;  %1377 = vrot.lane.b32.xlu1 %v2697_v7, %s2310_s26 }
  0xb4   : > { %759 = vst.msk [vmem:[#allocation3 + $0x8] sm:$0xff] %vm757_vm5, %v712_v9 }
  0xb5   : > { %588 = vrot.lane.b32.xlu0 %v2640_v14, %s2304_s30  ;;  %v726_v11 = vpop.permute.xlu1 %725 }
  0xb6   : > { %766 = vst.msk [vmem:[#allocation3 + $0x40] sm:$0xff] %vm757_vm5, %v726_v11 }
  0xb7   : > { %v839_v12 = vpop.permute.xlu0 %838  ;;  %477 = vrot.lane.b32.xlu1 %v2673_v51, %s2303_s29 }
  0xb8   : > { %887 = vst.msk [vmem:[#allocation3] sm:$0xff] %vm886_vm6, %v839_v12 }
  0xb9   : > { %590 = vrot.lane.b32.xlu0 %v2683_v63, %s2304_s30  ;;  %v728_v13 = vpop.permute.xlu1 %727 }
  0xba   : > { %767 = vst.msk [vmem:[#allocation3 + $0x48] sm:$0xff] %vm757_vm5, %v728_v13 }
  0xbb   : > { %v841_v15 = vpop.permute.xlu0 %840  ;;  %604 = vrot.lane.b32.xlu1 %v2647_v31, %s2304_s30  ;;  %v2747_v31 = vpack.c.bf16 %v914_v28, %v913_v27  ;;  %v917_v27 = vld [vmem:[#allocation2 + $0xc2] sm:$0xff]  ;;  %v918_v28 = vld [vmem:[#allocation2 + $0xca] sm:$0xff] }
  0xbc   : > { %888 = vst.msk [vmem:[#allocation3 + $0x8] sm:$0xff] %vm886_vm6, %v841_v15 }
  0xbd   : > { %717 = vrot.lane.b32.xlu0 %v2650_v32, %s2305_s4  ;;  %v855_v16 = vpop.permute.xlu1 %854 }
  0xbe   : > { %895 = vst.msk [vmem:[#allocation3 + $0x40] sm:$0xff] %vm886_vm6, %v855_v16 }
  0xbf   : > { %v968_v17 = vpop.permute.xlu0 %967  ;;  %606 = vrot.lane.b32.xlu1 %v2697_v7, %s2304_s30 }
  0xc0   : > { %1016 = vst.msk [vmem:[#allocation3] sm:$0xff] %vm1015_vm7, %v968_v17  ;;  %v675_v17 = vld [vmem:[#allocation2 + $0x180] sm:$0xff] }
  0xc1   : > { %719 = vrot.lane.b32.xlu0 %v2544_v41, %s2305_s4  ;;  %v857_v18 = vpop.permute.xlu1 %856 }
  0xc2   : > { %896 = vst.msk [vmem:[#allocation3 + $0x48] sm:$0xff] %vm886_vm6, %v857_v18  ;;  %v676_v18 = vld [vmem:[#allocation2 + $0x188] sm:$0xff] }
  0xc3   : > { %v970_v10 = vpop.permute.xlu0 %969  ;;  %733 = vrot.lane.b32.xlu1 %v2657_v37, %s2305_s4 }
  0xc4   : > { %1017 = vst.msk [vmem:[#allocation3 + $0x8] sm:$0xff] %vm1015_vm7, %v970_v10  ;;  %v789_v10 = vld [vmem:[#allocation2 + $0xc9] sm:$0xff] }
  0xc5   : > { %846 = vrot.lane.b32.xlu0 %v2661_v38, %s2306_s5  ;;  %v984_v23 = vpop.permute.xlu1 %983  ;;  %v2759_v38 = vpack.c.bf16 %v930_v35, %v929_v34  ;;  %v933_v34 = vld [vmem:[#allocation2 + $0x182] sm:$0xff]  ;;  %v934_v35 = vld [vmem:[#allocation2 + $0x18a] sm:$0xff] }
  0xc6   : > { %1024 = vst.msk [vmem:[#allocation3 + $0x40] sm:$0xff] %vm1015_vm7, %v984_v23  ;;  %v813_v23 = vpack.c.bf16 %v789_v10, %v788_v21 }
  0xc7   : > { %v1098_v24 = vpop.permute.xlu0 %1097  ;;  %735 = vrot.lane.b32.xlu1 %v2546_v43, %s2305_s4 }
  0xc8   : > { %1146 = vst.msk [vmem:[#allocation3] sm:$0xff] %vm1145_vm8, %v1098_v24 }
  0xc9   : > { %848 = vrot.lane.b32.xlu0 %v2731_v22, %s2306_s5  ;;  %v986_v14 = vpop.permute.xlu1 %985 }
  0xca   : > { %1025 = vst.msk [vmem:[#allocation3 + $0x48] sm:$0xff] %vm1015_vm7, %v986_v14  ;;  %v805_v14 = vld [vmem:[#allocation2 + $0x189] sm:$0xff] }
  0xcb   : > { %v1100_v29 = vpop.permute.xlu0 %1099  ;;  %862 = vrot.lane.b32.xlu1 %v2673_v51, %s2306_s5 }
  0xcc   : > { %1147 = vst.msk [vmem:[#allocation3 + $0x8] sm:$0xff] %vm1145_vm8, %v1100_v29 }
  0xcd   : > { %975 = vrot.lane.b32.xlu0 %v2683_v63, %s2307_s6  ;;  %v1114_v32 = vpop.permute.xlu1 %1113 }
  0xce   : > { %1154 = vst.msk [vmem:[#allocation3 + $0x40] sm:$0xff] %vm1145_vm8, %v1114_v32 }
  0xcf   : > { %v1227_v33 = vpop.permute.xlu0 %1226  ;;  %864 = vrot.lane.b32.xlu1 %v2743_v30, %s2306_s5 }
  0xd0   : > { %1275 = vst.msk [vmem:[#allocation3] sm:$0xff] %vm1274_vm9, %v1227_v33 }
  0xd1   : > { %977 = vrot.lane.b32.xlu0 %v2747_v31, %s2307_s6  ;;  %v1116_v36 = vpop.permute.xlu1 %1115 }
  0xd2   : > { %1155 = vst.msk [vmem:[#allocation3 + $0x48] sm:$0xff] %vm1145_vm8, %v1116_v36 }
  0xd3   : > { %v1229_v37 = vpop.permute.xlu0 %1228  ;;  %991 = vrot.lane.b32.xlu1 %v2697_v7, %s2307_s6 }
  0xd4   : > { %1276 = vst.msk [vmem:[#allocation3 + $0x8] sm:$0xff] %vm1274_vm9, %v1229_v37  ;;  %v1047_v37 = vld [vmem:[#allocation2 + $0xd8] sm:$0xff] }
  0xd5   : > { %1105 = vrot.lane.b32.xlu0 %v2544_v41, %s2308_s7  ;;  %v1243_v39 = vpop.permute.xlu1 %1242  ;;  %v2775_v41 = vpack.c.bf16 %v1173_v45, %v1172_v44 }
  0xd6   : > { %1283 = vst.msk [vmem:[#allocation3 + $0x40] sm:$0xff] %vm1274_vm9, %v1243_v39 }
  0xd7   : > { %v1356_v40 = vpop.permute.xlu0 %1355  ;;  %993 = vrot.lane.b32.xlu1 %v2759_v38, %s2307_s6 }
  0xd8   : > { %1404 = vst.msk [vmem:[#allocation3] sm:$0xff] %vm1403_vm10, %v1356_v40  ;;  %v950_v40 = vpack.c.bf16 %v934_v35, %v933_v34 }
  0xd9   : > { %1107 = vrot.lane.b32.xlu0 %v2572_v54, %s2308_s7  ;;  %v1245_v42 = vpop.permute.xlu1 %1244 }
  0xda   : > { %1284 = vst.msk [vmem:[#allocation3 + $0x48] sm:$0xff] %vm1274_vm9, %v1245_v42 }
  0xdb   : > { %v456_v46 = vpop.permute.xlu0 %455  ;;  %1121 = vrot.lane.b32.xlu1 %v2546_v43, %s2308_s7  ;;  %v1188_v43 = vld [vmem:[#allocation2 + $0x169] sm:$0xff] }
  0xdc   : > { %502 = vst.msk [vmem:[#allocation3 + $0x10] sm:$0xff] %vm499_vm3, %v456_v46  ;;  %v2788_v53 = vpack.c.bf16 %v1189_v50, %v1188_v43  ;;  %v1063_v46 = vld [vmem:[#allocation2 + $0x198] sm:$0xff] }
  0xdd   : > { %1234 = vrot.lane.b32.xlu0 %v2731_v22, %s2309_s17  ;;  %v1372_v47 = vpop.permute.xlu1 %1371 }
  0xde   : > { %1412 = vst.msk [vmem:[#allocation3 + $0x40] sm:$0xff] %vm1403_vm10, %v1372_v47 }
  0xdf   : > { %v1358_v48 = vpop.permute.xlu0 %1357  ;;  %v1420_v49 = vld [vmem:[#allocation3] sm:$0xff]  ;;  %1123 = vrot.lane.b32.xlu1 %v2585_v59, %s2308_s7 }
  0xe0   : > { %1405 = vst.msk [vmem:[#allocation3 + $0x8] sm:$0xff] %vm1403_vm10, %v1358_v48  ;;  %2140 = vmatprep.mubr.msk.bf16.mxu0 %vm1479_vm11, %v1420_v49  ;;  %v1176_v48 = vld [vmem:[#allocation2 + $0xd9] sm:$0xff]  ;;  %v1177_v49 = vld [vmem:[#allocation2 + $0xe1] sm:$0xff] }
  0xe1   : > { %1236 = vrot.lane.b32.xlu0 %v2775_v41, %s2309_s17  ;;  %v472_v51 = vpop.permute.xlu1 %471  ;;  %v1201_v50 = vpack.c.bf16 %v1177_v49, %v1176_v48 }
  0xe2   : > { %510 = vst.msk [vmem:[#allocation3 + $0x50] sm:$0xff] %vm499_vm3, %v472_v51 }
  0xe3   : > { %v458_v52 = vpop.permute.xlu0 %457  ;;  %1250 = vrot.lane.b32.xlu1 %v2743_v30, %s2309_s17 }
  0xe4   : > { %503 = vst.msk [vmem:[#allocation3 + $0x18] sm:$0xff] %vm499_vm3, %v458_v52 }
  0xe5   : > { %1363 = vrot.lane.b32.xlu0 %v2747_v31, %s2310_s26  ;;  %v1374_v55 = vpop.permute.xlu1 %1373  ;;  %v1428_v56 = vld [vmem:[#allocation3 + $0x40] sm:$0xff] }
  0xe6   : > { %1413 = vst.msk [vmem:[#allocation3 + $0x48] sm:$0xff] %vm1403_vm10, %v1374_v55  ;;  %2156 = vmatprep.mubr.msk.bf16.mxu1 %vm1479_vm11, %v1428_v56  ;;  %v1192_v55 = vld [vmem:[#allocation2 + $0x199] sm:$0xff]  ;;  %v1193_v56 = vld [vmem:[#allocation2 + $0x1a1] sm:$0xff] }
  0xe7   : > { %v585_v60 = vpop.permute.xlu0 %584  ;;  %v1421_v61 = vld [vmem:[#allocation3 + $0x8] sm:$0xff]  ;;  %1252 = vrot.lane.b32.xlu1 %v2788_v53, %s2309_s17 }
  0xe8   : > { %631 = vst.msk [vmem:[#allocation3 + $0x10] sm:$0xff] %vm628_vm4, %v585_v60  ;;  %2141 = vmatmul.mubr.msk.bf16.vlgmr.msra.gmra.mrb[0].mxu0 %vm1479_vm11, %v1421_v61  ;;  %v1306_v60 = vld [vmem:[#allocation2 + $0xe2] sm:$0xff] }
  0xe9   : > { %463 = vrot.lane.b32.xlu0 %v2731_v22, %s2303_s29  ;;  %v474_v63 = vpop.permute.xlu1 %473  ;;  %v692_v22 = vpack.c.bf16 %v676_v18, %v675_v17 }
  0xea   : > { %511 = vst.msk [vmem:[#allocation3 + $0x58] sm:$0xff] %vm499_vm3, %v474_v63  ;;  %v1330_v63 = vpack.c.bf16 %v1306_v60, %v1305_v58 }
  0xeb   : > { %v587_v0 = vpop.permute.xlu0 %586  ;;  %1379 = vrot.lane.b32.xlu1 %v2759_v38, %s2310_s26 }
  0xec   : > { %632 = vst.msk [vmem:[#allocation3 + $0x18] sm:$0xff] %vm628_vm4, %v587_v0 }
  0xed   : > { %1365 = vrot.lane.b32.xlu0 %v2800_v62, %s2310_s26  ;;  %v601_v3 = vpop.permute.xlu1 %600  ;;  %v1429_v4 = vld [vmem:[#allocation3 + $0x48] sm:$0xff] }
  0xee   : > { %639 = vst.msk [vmem:[#allocation3 + $0x50] sm:$0xff] %vm628_vm4, %v601_v3  ;;  %2157 = vmatmul.mubr.msk.bf16.vlgmr.msra.gmra.mrb[0].mxu1 %vm1479_vm11, %v1429_v4  ;;  %v1321_v4 = vld [vmem:[#allocation2 + $0x19a] sm:$0xff] }
  0xef   : > { %v714_v5 = vpop.permute.xlu0 %713  ;;  %479 = vrot.lane.b32.xlu1 %v2743_v30, %s2303_s29  ;;  %v821_v30 = vpack.c.bf16 %v805_v14, %v804_v26 }
  0xf0   : > { %760 = vst.msk [vmem:[#allocation3 + $0x10] sm:$0xff] %vm757_vm5, %v714_v5  ;;  %v1322_v5 = vld [vmem:[#allocation2 + $0x1a2] sm:$0xff] }
  0xf1   : > { %465 = vrot.lane.b32.xlu0 %v2775_v41, %s2303_s29  ;;  %v603_v7 = vpop.permute.xlu1 %602 }
  0xf2   : > { %640 = vst.msk [vmem:[#allocation3 + $0x58] sm:$0xff] %vm628_vm4, %v603_v7 }
  0xf3   : > { %v716_v8 = vpop.permute.xlu0 %715  ;;  %1381 = vrot.lane.b32.xlu1 %v2813_v6, %s2310_s26 }
  0xf4   : > { %761 = vst.msk [vmem:[#allocation3 + $0x18] sm:$0xff] %vm757_vm5, %v716_v8  ;;  %v1338_v8 = vpack.c.bf16 %v1322_v5, %v1321_v4 }
  0xf5   : > { %592 = vrot.lane.b32.xlu0 %v2747_v31, %s2304_s30  ;;  %v730_v9 = vpop.permute.xlu1 %729  ;;  %v942_v31 = vpack.c.bf16 %v918_v28, %v917_v27 }
  0xf6   : > { %768 = vst.msk [vmem:[#allocation3 + $0x50] sm:$0xff] %vm757_vm5, %v730_v9 }
  0xf7   : > { %v843_v11 = vpop.permute.xlu0 %842  ;;  %481 = vrot.lane.b32.xlu1 %v2788_v53, %s2303_s29 }
  0xf8   : > { %889 = vst.msk [vmem:[#allocation3 + $0x10] sm:$0xff] %vm886_vm6, %v843_v11 }
  0xf9   : > { %594 = vrot.lane.b32.xlu0 %v2800_v62, %s2304_s30  ;;  %v732_v12 = vpop.permute.xlu1 %731 }
  0xfa   : > { %769 = vst.msk [vmem:[#allocation3 + $0x58] sm:$0xff] %vm757_vm5, %v732_v12 }
  0xfb   : > { %v845_v13 = vpop.permute.xlu0 %844  ;;  %608 = vrot.lane.b32.xlu1 %v2759_v38, %s2304_s30  ;;  %v1048_v38 = vld [vmem:[#allocation2 + $0xe0] sm:$0xff] }
  0xfc   : > { %890 = vst.msk [vmem:[#allocation3 + $0x18] sm:$0xff] %vm886_vm6, %v845_v13  ;;  %v1072_v42 = vpack.c.bf16 %v1048_v38, %v1047_v37 }
  0xfd   : > { %721 = vrot.lane.b32.xlu0 %v2572_v54, %s2305_s4  ;;  %v859_v15 = vpop.permute.xlu1 %858 }
  0xfe   : > { %897 = vst.msk [vmem:[#allocation3 + $0x50] sm:$0xff] %vm886_vm6, %v859_v15 }
  0xff   : > { %v972_v16 = vpop.permute.xlu0 %971  ;;  %610 = vrot.lane.b32.xlu1 %v2813_v6, %s2304_s30 }
 0x100   : > { %1018 = vst.msk [vmem:[#allocation3 + $0x10] sm:$0xff] %vm1015_vm7, %v972_v16 }
 0x101   : > { %723 = vrot.lane.b32.xlu0 %v2517_v20, %s2305_s4  ;;  %v861_v19 = vpop.permute.xlu1 %860 }
 0x102   : > { %898 = vst.msk [vmem:[#allocation3 + $0x58] sm:$0xff] %vm886_vm6, %v861_v19 }
 0x103   : > { %v974_v54 = vpop.permute.xlu0 %973  ;;  %737 = vrot.lane.b32.xlu1 %v2585_v59, %s2305_s4 }
 0x104   : > { %1019 = vst.msk [vmem:[#allocation3 + $0x18] sm:$0xff] %vm1015_vm7, %v974_v54 }
 0x105   : > { %850 = vrot.lane.b32.xlu0 %v2775_v41, %s2306_s5  ;;  %v988_v24 = vpop.permute.xlu1 %987  ;;  %v1064_v41 = vld [vmem:[#allocation2 + $0x1a0] sm:$0xff] }
 0x106   : > { %1026 = vst.msk [vmem:[#allocation3 + $0x50] sm:$0xff] %vm1015_vm7, %v988_v24 }
 0x107   : > { %v1102_v25 = vpop.permute.xlu0 %1101  ;;  %739 = vrot.lane.b32.xlu1 %v692_v22, %s2305_s4  ;;  %s1934_s4 = sshll.u32 %s161_s28, 7 }
 0x108   : > { %1148 = vst.msk [vmem:[#allocation3 + $0x10] sm:$0xff] %vm1145_vm8, %v1102_v25 }
 0x109   : > { %852 = vrot.lane.b32.xlu0 %v813_v23, %s2306_s5  ;;  %v990_v59 = vpop.permute.xlu1 %989 }
 0x10a   : > { %1027 = vst.msk [vmem:[#allocation3 + $0x58] sm:$0xff] %vm1015_vm7, %v990_v59 }
 0x10b   : > { %v1104_v29 = vpop.permute.xlu0 %1103  ;;  %866 = vrot.lane.b32.xlu1 %v2788_v53, %s2306_s5 }
 0x10c   : > { %1149 = vst.msk [vmem:[#allocation3 + $0x18] sm:$0xff] %vm1145_vm8, %v1104_v29 }
 0x10d   : > { %979 = vrot.lane.b32.xlu0 %v2800_v62, %s2307_s6  ;;  %v1118_v32 = vpop.permute.xlu1 %1117  ;;  %v1209_v62 = vpack.c.bf16 %v1193_v56, %v1192_v55 }
 0x10e   : > { %1156 = vst.msk [vmem:[#allocation3 + $0x50] sm:$0xff] %vm1145_vm8, %v1118_v32 }
 0x10f   : > { %v1231_v33 = vpop.permute.xlu0 %1230  ;;  %868 = vrot.lane.b32.xlu1 %v821_v30, %s2306_s5  ;;  %s2973_s5 = scalar_lea.vmem [#allocation4], %s1934_s4 }
 0x110   : > { %1277 = vst.msk [vmem:[#allocation3 + $0x10] sm:$0xff] %vm1274_vm9, %v1231_v33 }
 0x111   : > { %981 = vrot.lane.b32.xlu0 %v942_v31, %s2307_s6  ;;  %v1120_v36 = vpop.permute.xlu1 %1119 }
 0x112   : > { %1157 = vst.msk [vmem:[#allocation3 + $0x58] sm:$0xff] %vm1145_vm8, %v1120_v36 }
 0x113   : > { %v1233_v39 = vpop.permute.xlu0 %1232  ;;  %995 = vrot.lane.b32.xlu1 %v2813_v6, %s2307_s6 }
 0x114   : > { %1278 = vst.msk [vmem:[#allocation3 + $0x18] sm:$0xff] %vm1274_vm9, %v1233_v39 }
 0x115   : > { %1109 = vrot.lane.b32.xlu0 %v2517_v20, %s2308_s7  ;;  %v1247_v44 = vpop.permute.xlu1 %1246  ;;  %v1080_v20 = vpack.c.bf16 %v1064_v41, %v1063_v46 }
 0x116   : > { %1285 = vst.msk [vmem:[#allocation3 + $0x50] sm:$0xff] %vm1274_vm9, %v1247_v44 }
 0x117   : > { %v1360_v45 = vpop.permute.xlu0 %1359  ;;  %997 = vrot.lane.b32.xlu1 %v950_v40, %s2307_s6  ;;  %s2029_s6 = sshll.u32 %s2354_s16, 11  ;;  %s3078_s16 = scalar_lea.sflag [#allocation5], %s161_s28 }
 0x118   : > { %1406 = vst.msk [vmem:[#allocation3 + $0x10] sm:$0xff] %vm1403_vm10, %v1360_v45  ;;  %s3066_s11 = scalar_lea.hbm %s3124_s3, %s2029_s6 }
 0x119   : > { %1111 = vrot.lane.b32.xlu0 %v1072_v42, %s2308_s7  ;;  %v1249_v47 = vpop.permute.xlu1 %1248 }
 0x11a   : > { %1286 = vst.msk [vmem:[#allocation3 + $0x58] sm:$0xff] %vm1274_vm9, %v1249_v47 }
 0x11b   : > { %v460_v43 = vpop.permute.xlu0 %459  ;;  %1125 = vrot.lane.b32.xlu1 %v692_v22, %s2308_s7 }
 0x11c   : > { %504 = vst.msk [vmem:[#allocation3 + $0x20] sm:$0xff] %vm499_vm3, %v460_v43 }
 0x11d   : > { %1238 = vrot.lane.b32.xlu0 %v813_v23, %s2309_s17  ;;  %v1376_v51 = vpop.permute.xlu1 %1375 }
 0x11e   : > { %1414 = vst.msk [vmem:[#allocation3 + $0x50] sm:$0xff] %vm1403_vm10, %v1376_v51 }
 0x11f   : > { %v1362_v52 = vpop.permute.xlu0 %1361  ;;  %v1422_v53 = vld [vmem:[#allocation3 + $0x10] sm:$0xff]  ;;  %1127 = vrot.lane.b32.xlu1 %v1080_v20, %s2308_s7  ;;  %s1868_s7 = sshll.u32 %s2973_s5, 4  ;;  %s3070_s7 = int_to_ptr.vmem [resolvable:$true] %s1868_s7 }
 0x120   : > { %1407 = vst.msk [vmem:[#allocation3 + $0x18] sm:$0xff] %vm1403_vm10, %v1362_v52  ;;  %2144 = vmatprep.mubr.msk.bf16.mxu0 %vm1479_vm11, %v1422_v53  ;;  %p2245_p0 = scmp.lt.s32.totalorder %s3070_s7, %s2243_s20 }
 0x121   : > { %1240 = vrot.lane.b32.xlu0 %v1201_v50, %s2309_s17  ;;  %v476_v57 = vpop.permute.xlu1 %475 }
 0x122   : > { %512 = vst.msk [vmem:[#allocation3 + $0x60] sm:$0xff] %vm499_vm3, %v476_v57 }
 0x123   : > { %v462_v61 = vpop.permute.xlu0 %461  ;;  %1254 = vrot.lane.b32.xlu1 %v821_v30, %s2309_s17 }
 0x124   : > { %505 = vst.msk [vmem:[#allocation3 + $0x28] sm:$0xff] %vm499_vm3, %v462_v61 }
 0x125   : > { %1367 = vrot.lane.b32.xlu0 %v942_v31, %s2310_s26  ;;  %v1378_v0 = vpop.permute.xlu1 %1377  ;;  %v1430_v1 = vld [vmem:[#allocation3 + $0x50] sm:$0xff] }
 0x126   : > { %1415 = vst.msk [vmem:[#allocation3 + $0x58] sm:$0xff] %vm1403_vm10, %v1378_v0  ;;  %2160 = vmatprep.mubr.msk.bf16.mxu1 %vm1479_vm11, %v1430_v1 }
 0x127   : > { %v589_v2 = vpop.permute.xlu0 %588  ;;  %v1423_v3 = vld [vmem:[#allocation3 + $0x18] sm:$0xff]  ;;  %1256 = vrot.lane.b32.xlu1 %v1209_v62, %s2309_s17  ;;  %s2238_s17 = scalar_lea.vmem %s3070_s7, 2048 }
 0x128   : > { %633 = vst.msk [vmem:[#allocation3 + $0x20] sm:$0xff] %vm628_vm4, %v589_v2  ;;  %2145 = vmatmul.mubr.msk.bf16.gmra.mrb[4].mxu0 %vm1479_vm11, %v1423_v3  ;;  %p2239_p11 = scmp.ne.s32.totalorder %s3070_s7, %s2238_s17  ;;  %p2246_p1 = scmp.lt.s32.totalorder %s2244_s24, %s2238_s17 }
 0x129   : > { %1369 = vrot.lane.b32.xlu0 %v1330_v63, %s2310_s26  ;;  %v478_v6 = vpop.permute.xlu1 %477 }
 0x12a   : > { %513 = vst.msk [vmem:[#allocation3 + $0x68] sm:$0xff] %vm499_vm3, %v478_v6  ;;  %p2240_p12 = pnand %p2239_p11, %p2371_p5  ;;  %p2247_p2 = por %p2246_p1, %p2245_p0 }
 0x12b   : > { %v591_v7 = vpop.permute.xlu0 %590  ;;  %1383 = vrot.lane.b32.xlu1 %v950_v40, %s2310_s26 }
 0x12c   : > { %634 = vst.msk [vmem:[#allocation3 + $0x28] sm:$0xff] %vm628_vm4, %v591_v7  ;;  %p2241_p13 = pneg %p2240_p12 }
 0x12d   : > { %v605_v9 = vpop.permute.xlu1 %604  ;;  %v1431_v11 = vld [vmem:[#allocation3 + $0x58] sm:$0xff] }
 0x12e   : > { %641 = vst.msk [vmem:[#allocation3 + $0x60] sm:$0xff] %vm628_vm4, %v605_v9  ;;  %2161 = vmatmul.mubr.msk.bf16.gmra.mrb[4].mxu1 %vm1479_vm11, %v1431_v11  ;;  %p2248_p3 = pnand %p2247_p2, %p2241_p13 }
 0x12f   : > { %v718_v12 = vpop.permute.xlu0 %717  ;;  %1385 = vrot.lane.b32.xlu1 %v1338_v8, %s2310_s26 }
 0x130   : > { %762 = vst.msk [vmem:[#allocation3 + $0x20] sm:$0xff] %vm757_vm5, %v718_v12 }
 0x131   : > { %v607_v13 = vpop.permute.xlu1 %606 }
 0x132   : > { %642 = vst.msk [vmem:[#allocation3 + $0x68] sm:$0xff] %vm628_vm4, %v607_v13  ;;  %v2965_v13 = vld [vmem:[%s3123_s2] ss:$0 sm:$0xff] }
 0x133   : > { %v720_v15 = vpop.permute.xlu0 %719 }
 0x134   : > { %763 = vst.msk [vmem:[#allocation3 + $0x28] sm:$0xff] %vm757_vm5, %v720_v15 }
 0x135   : > { %v734_v16 = vpop.permute.xlu1 %733 }
 0x136   : > { %770 = vst.msk [vmem:[#allocation3 + $0x60] sm:$0xff] %vm757_vm5, %v734_v16 }
 0x137   : > { %v847_v17 = vpop.permute.xlu0 %846 }
 0x138   : > { %891 = vst.msk [vmem:[#allocation3 + $0x20] sm:$0xff] %vm886_vm6, %v847_v17 }
 0x139   : > { %v736_v18 = vpop.permute.xlu1 %735 }
 0x13a   : > { %771 = vst.msk [vmem:[#allocation3 + $0x68] sm:$0xff] %vm757_vm5, %v736_v18 }
 0x13b   : > { %v849_v19 = vpop.permute.xlu0 %848 }
 0x13c   : > { %892 = vst.msk [vmem:[#allocation3 + $0x28] sm:$0xff] %vm886_vm6, %v849_v19 }
 0x13d   : > { %v863_v21 = vpop.permute.xlu1 %862 }
 0x13e   : > { %899 = vst.msk [vmem:[#allocation3 + $0x60] sm:$0xff] %vm886_vm6, %v863_v21 }
 0x13f   : > { %v976_v10 = vpop.permute.xlu0 %975 }
 0x140   : > { %1020 = vst.msk [vmem:[#allocation3 + $0x20] sm:$0xff] %vm1015_vm7, %v976_v10 }
 0x141   : > { %v865_v54 = vpop.permute.xlu1 %864 }
 0x142   : > { %900 = vst.msk [vmem:[#allocation3 + $0x68] sm:$0xff] %vm886_vm6, %v865_v54 }
 0x143   : > { %v978_v22 = vpop.permute.xlu0 %977 }
 0x144   : > { %1021 = vst.msk [vmem:[#allocation3 + $0x28] sm:$0xff] %vm1015_vm7, %v978_v22 }
 0x145   : > { %v992_v23 = vpop.permute.xlu1 %991 }
 0x146   : > { %1028 = vst.msk [vmem:[#allocation3 + $0x60] sm:$0xff] %vm1015_vm7, %v992_v23 }
 0x147   : > { %v1106_v24 = vpop.permute.xlu0 %1105 }
 0x148   : > { %1150 = vst.msk [vmem:[#allocation3 + $0x20] sm:$0xff] %vm1145_vm8, %v1106_v24 }
 0x149   : > { %v994_v25 = vpop.permute.xlu1 %993 }
 0x14a   : > { %1029 = vst.msk [vmem:[#allocation3 + $0x68] sm:$0xff] %vm1015_vm7, %v994_v25 }
 0x14b   : > { %v1108_v26 = vpop.permute.xlu0 %1107 }
 0x14c   : > { %1151 = vst.msk [vmem:[#allocation3 + $0x28] sm:$0xff] %vm1145_vm8, %v1108_v26 }
 0x14d   : > { %v1122_v14 = vpop.permute.xlu1 %1121 }
 0x14e   : > { %1158 = vst.msk [vmem:[#allocation3 + $0x60] sm:$0xff] %vm1145_vm8, %v1122_v14 }
 0x14f   : > { %v1235_v59 = vpop.permute.xlu0 %1234 }
 0x150   : > { %1279 = vst.msk [vmem:[#allocation3 + $0x20] sm:$0xff] %vm1274_vm9, %v1235_v59 }
 0x151   : > { %v1124_v27 = vpop.permute.xlu1 %1123 }
 0x152   : > { %1159 = vst.msk [vmem:[#allocation3 + $0x68] sm:$0xff] %vm1145_vm8, %v1124_v27 }
 0x153   : > { %v1237_v28 = vpop.permute.xlu0 %1236 }
 0x154   : > { %1280 = vst.msk [vmem:[#allocation3 + $0x28] sm:$0xff] %vm1274_vm9, %v1237_v28 }
 0x155   : > { %v1251_v29 = vpop.permute.xlu1 %1250 }
 0x156   : > { %1287 = vst.msk [vmem:[#allocation3 + $0x60] sm:$0xff] %vm1274_vm9, %v1251_v29 }
 0x157   : > { %v1364_v30 = vpop.permute.xlu0 %1363 }
 0x158   : > { %1408 = vst.msk [vmem:[#allocation3 + $0x20] sm:$0xff] %vm1403_vm10, %v1364_v30 }
 0x159   : > { %v1253_v31 = vpop.permute.xlu1 %1252 }
 0x15a   : > { %1288 = vst.msk [vmem:[#allocation3 + $0x68] sm:$0xff] %vm1274_vm9, %v1253_v31 }
 0x15b   : > { %v464_v32 = vpop.permute.xlu0 %463 }
 0x15c   : > { %506 = vst.msk [vmem:[#allocation3 + $0x30] sm:$0xff] %vm499_vm3, %v464_v32 }
 0x15d   : > { %v1380_v33 = vpop.permute.xlu1 %1379 }
 0x15e   : > { %1416 = vst.msk [vmem:[#allocation3 + $0x60] sm:$0xff] %vm1403_vm10, %v1380_v33 }
 0x15f   : > { %v1366_v34 = vpop.permute.xlu0 %1365  ;;  %v1424_v35 = vld [vmem:[#allocation3 + $0x20] sm:$0xff] }
 0x160   : > { %1409 = vst.msk [vmem:[#allocation3 + $0x28] sm:$0xff] %vm1403_vm10, %v1366_v34  ;;  %2148 = vmatprep.mubr.msk.bf16.mxu0 %vm1479_vm11, %v1424_v35 }
 0x161   : > { %v480_v36 = vpop.permute.xlu1 %479 }
 0x162   : > { %514 = vst.msk [vmem:[#allocation3 + $0x70] sm:$0xff] %vm499_vm3, %v480_v36 }
 0x163   : > { %v466_v37 = vpop.permute.xlu0 %465 }
 0x164   : > { %507 = vst.msk [vmem:[#allocation3 + $0x38] sm:$0xff] %vm499_vm3, %v466_v37 }
 0x165   : > { %v1382_v38 = vpop.permute.xlu1 %1381  ;;  %v1432_v39 = vld [vmem:[#allocation3 + $0x60] sm:$0xff] }
 0x166   : > { %1417 = vst.msk [vmem:[#allocation3 + $0x68] sm:$0xff] %vm1403_vm10, %v1382_v38  ;;  %2164 = vmatprep.mubr.msk.bf16.mxu1 %vm1479_vm11, %v1432_v39 }
 0x167   : > { %v593_v40 = vpop.permute.xlu0 %592  ;;  %v1425_v42 = vld [vmem:[#allocation3 + $0x28] sm:$0xff] }
 0x168   : > { %635 = vst.msk [vmem:[#allocation3 + $0x30] sm:$0xff] %vm628_vm4, %v593_v40  ;;  %2149 = vmatmul.mubr.msk.bf16.gmra.mrb[8].mxu0 %vm1479_vm11, %v1425_v42 }
 0x169   : > { %v482_v44 = vpop.permute.xlu1 %481 }
 0x16a   : > { %515 = vst.msk [vmem:[#allocation3 + $0x78] sm:$0xff] %vm499_vm3, %v482_v44 }
 0x16b   : > { %v595_v45 = vpop.permute.xlu0 %594 }
 0x16c   : > { %636 = vst.msk [vmem:[#allocation3 + $0x38] sm:$0xff] %vm628_vm4, %v595_v45 }
 0x16d   : > { %v609_v46 = vpop.permute.xlu1 %608  ;;  %v1433_v41 = vld [vmem:[#allocation3 + $0x68] sm:$0xff] }
 0x16e   : > { %643 = vst.msk [vmem:[#allocation3 + $0x70] sm:$0xff] %vm628_vm4, %v609_v46  ;;  %2165 = vmatmul.mubr.msk.bf16.gmra.mrb[8].mxu1 %vm1479_vm11, %v1433_v41 }
 0x16f   : > { %v722_v47 = vpop.permute.xlu0 %721 }
 0x170   : > { %764 = vst.msk [vmem:[#allocation3 + $0x30] sm:$0xff] %vm757_vm5, %v722_v47 }
 0x171   : > { %v611_v48 = vpop.permute.xlu1 %610 }
 0x172   : > { %644 = vst.msk [vmem:[#allocation3 + $0x78] sm:$0xff] %vm628_vm4, %v611_v48 }
 0x173   : > { %v724_v49 = vpop.permute.xlu0 %723 }
 0x174   : > { %765 = vst.msk [vmem:[#allocation3 + $0x38] sm:$0xff] %vm757_vm5, %v724_v49 }
 0x175   : > { %v738_v43 = vpop.permute.xlu1 %737 }
 0x176   : > { %772 = vst.msk [vmem:[#allocation3 + $0x70] sm:$0xff] %vm757_vm5, %v738_v43 }
 0x177   : > { %v851_v20 = vpop.permute.xlu0 %850 }
 0x178   : > { %893 = vst.msk [vmem:[#allocation3 + $0x30] sm:$0xff] %vm886_vm6, %v851_v20 }
 0x179   : > { %v740_v50 = vpop.permute.xlu1 %739 }
 0x17a   : > { %773 = vst.msk [vmem:[#allocation3 + $0x78] sm:$0xff] %vm757_vm5, %v740_v50 }
 0x17b   : > { %v853_v51 = vpop.permute.xlu0 %852 }
 0x17c   : > { %894 = vst.msk [vmem:[#allocation3 + $0x38] sm:$0xff] %vm886_vm6, %v853_v51 }
 0x17d   : > { %v867_v52 = vpop.permute.xlu1 %866 }
 0x17e   : > { %901 = vst.msk [vmem:[#allocation3 + $0x70] sm:$0xff] %vm886_vm6, %v867_v52 }
 0x17f   : > { %v980_v53 = vpop.permute.xlu0 %979 }
 0x180   : > { %1022 = vst.msk [vmem:[#allocation3 + $0x30] sm:$0xff] %vm1015_vm7, %v980_v53 }
 0x181   : > { %v869_v55 = vpop.permute.xlu1 %868 }
 0x182   : > { %902 = vst.msk [vmem:[#allocation3 + $0x78] sm:$0xff] %vm886_vm6, %v869_v55 }
 0x183   : > { %v982_v56 = vpop.permute.xlu0 %981 }
 0x184   : > { %1023 = vst.msk [vmem:[#allocation3 + $0x38] sm:$0xff] %vm1015_vm7, %v982_v56 }
 0x185   : > { %v996_v57 = vpop.permute.xlu1 %995 }
 0x186   : > { %1030 = vst.msk [vmem:[#allocation3 + $0x70] sm:$0xff] %vm1015_vm7, %v996_v57 }
 0x187   : > { %v1110_v58 = vpop.permute.xlu0 %1109 }
 0x188   : > { %1152 = vst.msk [vmem:[#allocation3 + $0x30] sm:$0xff] %vm1145_vm8, %v1110_v58 }
 0x189   : > { %v998_v60 = vpop.permute.xlu1 %997 }
 0x18a   : > { %1031 = vst.msk [vmem:[#allocation3 + $0x78] sm:$0xff] %vm1015_vm7, %v998_v60 }
 0x18b   : > { %v1112_v61 = vpop.permute.xlu0 %1111 }
 0x18c   : > { %1153 = vst.msk [vmem:[#allocation3 + $0x38] sm:$0xff] %vm1145_vm8, %v1112_v61 }
 0x18d   : > { %v1126_v62 = vpop.permute.xlu1 %1125 }
 0x18e   : > { %1160 = vst.msk [vmem:[#allocation3 + $0x70] sm:$0xff] %vm1145_vm8, %v1126_v62 }
 0x18f   : > { %v1239_v63 = vpop.permute.xlu0 %1238 }
 0x190   : > { %1281 = vst.msk [vmem:[#allocation3 + $0x30] sm:$0xff] %vm1274_vm9, %v1239_v63 }
 0x191   : > { %v1128_v0 = vpop.permute.xlu1 %1127 }
 0x192   : > { %1161 = vst.msk [vmem:[#allocation3 + $0x78] sm:$0xff] %vm1145_vm8, %v1128_v0 }
 0x193   : > { %v1241_v1 = vpop.permute.xlu0 %1240 }
 0x194   : > { %1282 = vst.msk [vmem:[#allocation3 + $0x38] sm:$0xff] %vm1274_vm9, %v1241_v1 }
 0x195   : > { %v1255_v2 = vpop.permute.xlu1 %1254 }
 0x196   : > { %1289 = vst.msk [vmem:[#allocation3 + $0x70] sm:$0xff] %vm1274_vm9, %v1255_v2 }
 0x197   : > { %v1368_v3 = vpop.permute.xlu0 %1367 }
 0x198   : > { %1410 = vst.msk [vmem:[#allocation3 + $0x30] sm:$0xff] %vm1403_vm10, %v1368_v3 }
 0x199   : > { %v1257_v4 = vpop.permute.xlu1 %1256 }
 0x19a   : > { %1290 = vst.msk [vmem:[#allocation3 + $0x78] sm:$0xff] %vm1274_vm9, %v1257_v4 }
 0x19b   : > { %v1370_v5 = vpop.permute.xlu0 %1369 }
 0x19c   : > { %1411 = vst.msk [vmem:[#allocation3 + $0x38] sm:$0xff] %vm1403_vm10, %v1370_v5 }
 0x19d   : > { %v1384_v6 = vpop.permute.xlu1 %1383 }
 0x19e   : > { %1418 = vst.msk [vmem:[#allocation3 + $0x70] sm:$0xff] %vm1403_vm10, %v1384_v6 }
 0x19f   : > { %v1426_v7 = vld [vmem:[#allocation3 + $0x30] sm:$0xff] }
 0x1a0   : > { %2152 = vmatprep.mubr.msk.bf16.mxu0 %vm1479_vm11, %v1426_v7 }
 0x1a1   : > { %v1386_v8 = vpop.permute.xlu1 %1385 }
 0x1a2   : > { %1419 = vst.msk [vmem:[#allocation3 + $0x78] sm:$0xff] %vm1403_vm10, %v1386_v8 }
 0x1a3   : > { %v1427_v9 = vld [vmem:[#allocation3 + $0x38] sm:$0xff] }
 0x1a4   : > { %2153 = vmatmul.mubr.msk.bf16.gmra.mrb[12].mxu0 %vm1479_vm11, %v1427_v9 }
 0x1a5   : > { %v1434_v11 = vld [vmem:[#allocation3 + $0x70] sm:$0xff] }
 0x1a6   : > { %2168 = vmatprep.mubr.msk.bf16.mxu1 %vm1479_vm11, %v1434_v11 }
 0x1a9   : > { %v1435_v12 = vld [vmem:[#allocation3 + $0x78] sm:$0xff] }
 0x1aa   : > { %2169 = vmatmul.mubr.msk.bf16.gmra.mrb[12].mxu1 %vm1479_vm11, %v1435_v12 }
 0x1bb   : > { %v2142_v15 = vpop.f32.mrb[0].mxu0 }
 0x1bc   : > { %v1575_v16 = vadd.f32 %v2142_v15, %v2965_v13  ;;  %v1566_v17 = vpop.f32.mrb[1].mxu0 }
 0x1bd   : > { %v1567_v18 = vadd.f32 %v2965_v13, %v1566_v17  ;;  %v2143_v19 = vpop.f32.mrb[2].mxu0 }
 0x1be   : > { %v1999_v21 = vpack.c.bf16 %v1575_v16, %v1575_v16  ;;  %v1578_v10 = vadd.f32 %v2143_v19, %v2965_v13  ;;  %v1569_v54 = vpop.f32.mrb[3].mxu0 }
 0x1bf   : > { %v1997_v22 = vpack.c.bf16 %v1567_v18, %v1567_v18  ;;  %v1570_v23 = vadd.f32 %v2965_v13, %v1569_v54 }
 0x1c0   : > { %1824 = vst.msk [vmem:[%s2973_s5 + $0x8] sm:$0xf] %vm1821_vm12, %v1999_v21  ;;  %v2000_v24 = vpack.c.bf16 %v1578_v10, %v1578_v10 }
 0x1c1   : > { %1822 = vst.msk [vmem:[%s2973_s5] sm:$0xf] %vm1821_vm12, %v1997_v22  ;;  %v1998_v25 = vpack.c.bf16 %v1570_v23, %v1570_v23  ;;  %v2158_v26 = vpop.f32.mrb[0].mxu1 }
 0x1c2   : > { %1825 = vst.msk [vmem:[%s2973_s5 + $0xc] sm:$0xf] %vm1821_vm12, %v2000_v24  ;;  %v1639_v14 = vadd.f32 %v2158_v26, %v2965_v13  ;;  %v1630_v59 = vpop.f32.mrb[1].mxu1 }
 0x1c3   : > { %1823 = vst.msk [vmem:[%s2973_s5 + $0x4] sm:$0xf] %vm1821_vm12, %v1998_v25  ;;  %v1631_v27 = vadd.f32 %v2965_v13, %v1630_v59  ;;  %v2159_v28 = vpop.f32.mrb[2].mxu1 }
 0x1c4   : > { %v2015_v29 = vpack.c.bf16 %v1639_v14, %v1639_v14  ;;  %v1642_v30 = vadd.f32 %v2159_v28, %v2965_v13  ;;  %v1633_v31 = vpop.f32.mrb[3].mxu1 }
 0x1c5   : > { %v2013_v32 = vpack.c.bf16 %v1631_v27, %v1631_v27  ;;  %v1634_v33 = vadd.f32 %v2965_v13, %v1633_v31 }
 0x1c6   : > { %1840 = vst.msk [vmem:[%s2973_s5 + $0x48] sm:$0xf] %vm1821_vm12, %v2015_v29  ;;  %v2016_v34 = vpack.c.bf16 %v1642_v30, %v1642_v30 }
 0x1c7   : > { %1838 = vst.msk [vmem:[%s2973_s5 + $0x40] sm:$0xf] %vm1821_vm12, %v2013_v32  ;;  %v2014_v35 = vpack.c.bf16 %v1634_v33, %v1634_v33 }
 0x1c8   : > { %1841 = vst.msk [vmem:[%s2973_s5 + $0x4c] sm:$0xf] %vm1821_vm12, %v2016_v34 }
 0x1c9   : > { %1839 = vst.msk [vmem:[%s2973_s5 + $0x44] sm:$0xf] %vm1821_vm12, %v2014_v35 }
 0x1fb   : > { %v2146_v36 = vpop.f32.mrb[4].mxu0 }
 0x1fc   : > { %v1591_v37 = vadd.f32 %v2146_v36, %v2965_v13  ;;  %v1582_v38 = vpop.f32.mrb[5].mxu0 }
 0x1fd   : > { %v1583_v39 = vadd.f32 %v2965_v13, %v1582_v38  ;;  %v2147_v40 = vpop.f32.mrb[6].mxu0 }
 0x1fe   : > { %v2003_v42 = vpack.c.bf16 %v1591_v37, %v1591_v37  ;;  %v1594_v44 = vadd.f32 %v2147_v40, %v2965_v13  ;;  %v1585_v45 = vpop.f32.mrb[7].mxu0 }
 0x1ff   : > { %v2001_v46 = vpack.c.bf16 %v1583_v39, %v1583_v39  ;;  %v1586_v41 = vadd.f32 %v2965_v13, %v1585_v45 }
 0x200   : > { %1828 = vst.msk [vmem:[%s2973_s5 + $0x18] sm:$0xf] %vm1821_vm12, %v2003_v42  ;;  %v2004_v47 = vpack.c.bf16 %v1594_v44, %v1594_v44 }
 0x201   : > { %1826 = vst.msk [vmem:[%s2973_s5 + $0x10] sm:$0xf] %vm1821_vm12, %v2001_v46  ;;  %v2002_v48 = vpack.c.bf16 %v1586_v41, %v1586_v41  ;;  %v2162_v49 = vpop.f32.mrb[4].mxu1 }
 0x202   : > { %1829 = vst.msk [vmem:[%s2973_s5 + $0x1c] sm:$0xf] %vm1821_vm12, %v2004_v47  ;;  %v1655_v43 = vadd.f32 %v2162_v49, %v2965_v13  ;;  %v1646_v20 = vpop.f32.mrb[5].mxu1 }
 0x203   : > { %1827 = vst.msk [vmem:[%s2973_s5 + $0x14] sm:$0xf] %vm1821_vm12, %v2002_v48  ;;  %v1647_v50 = vadd.f32 %v2965_v13, %v1646_v20  ;;  %v2163_v51 = vpop.f32.mrb[6].mxu1 }
 0x204   : > { %v2019_v52 = vpack.c.bf16 %v1655_v43, %v1655_v43  ;;  %v1658_v53 = vadd.f32 %v2163_v51, %v2965_v13  ;;  %v1649_v55 = vpop.f32.mrb[7].mxu1 }
 0x205   : > { %v2017_v56 = vpack.c.bf16 %v1647_v50, %v1647_v50  ;;  %v1650_v57 = vadd.f32 %v2965_v13, %v1649_v55 }
 0x206   : > { %1844 = vst.msk [vmem:[%s2973_s5 + $0x58] sm:$0xf] %vm1821_vm12, %v2019_v52  ;;  %v2020_v58 = vpack.c.bf16 %v1658_v53, %v1658_v53 }
 0x207   : > { %1842 = vst.msk [vmem:[%s2973_s5 + $0x50] sm:$0xf] %vm1821_vm12, %v2017_v56  ;;  %v2018_v60 = vpack.c.bf16 %v1650_v57, %v1650_v57 }
 0x208   : > { %1845 = vst.msk [vmem:[%s2973_s5 + $0x5c] sm:$0xf] %vm1821_vm12, %v2020_v58 }
 0x209   : > { %1843 = vst.msk [vmem:[%s2973_s5 + $0x54] sm:$0xf] %vm1821_vm12, %v2018_v60 }
 0x23b   : > { %v2150_v61 = vpop.f32.mrb[8].mxu0 }
 0x23c   : > { %v1607_v62 = vadd.f32 %v2150_v61, %v2965_v13  ;;  %v1598_v63 = vpop.f32.mrb[9].mxu0 }
 0x23d   : > { %v1599_v0 = vadd.f32 %v2965_v13, %v1598_v63  ;;  %v2151_v1 = vpop.f32.mrb[10].mxu0 }
 0x23e   : > { %v2007_v2 = vpack.c.bf16 %v1607_v62, %v1607_v62  ;;  %v1610_v3 = vadd.f32 %v2151_v1, %v2965_v13  ;;  %v1601_v4 = vpop.f32.mrb[11].mxu0 }
 0x23f   : > { %v2005_v5 = vpack.c.bf16 %v1599_v0, %v1599_v0  ;;  %v1602_v6 = vadd.f32 %v2965_v13, %v1601_v4 }
 0x240   : > { %1832 = vst.msk [vmem:[%s2973_s5 + $0x28] sm:$0xf] %vm1821_vm12, %v2007_v2  ;;  %v2008_v7 = vpack.c.bf16 %v1610_v3, %v1610_v3 }
 0x241   : > { %1830 = vst.msk [vmem:[%s2973_s5 + $0x20] sm:$0xf] %vm1821_vm12, %v2005_v5  ;;  %v2006_v8 = vpack.c.bf16 %v1602_v6, %v1602_v6  ;;  %v2166_v9 = vpop.f32.mrb[8].mxu1 }
 0x242   : > { %1833 = vst.msk [vmem:[%s2973_s5 + $0x2c] sm:$0xf] %vm1821_vm12, %v2008_v7  ;;  %v1671_v11 = vadd.f32 %v2166_v9, %v2965_v13  ;;  %v1662_v12 = vpop.f32.mrb[9].mxu1 }
 0x243   : > { %1831 = vst.msk [vmem:[%s2973_s5 + $0x24] sm:$0xf] %vm1821_vm12, %v2006_v8  ;;  %v1663_v15 = vadd.f32 %v2965_v13, %v1662_v12  ;;  %v2167_v16 = vpop.f32.mrb[10].mxu1 }
 0x244   : > { %v2023_v17 = vpack.c.bf16 %v1671_v11, %v1671_v11  ;;  %v1674_v18 = vadd.f32 %v2167_v16, %v2965_v13  ;;  %v1665_v19 = vpop.f32.mrb[11].mxu1 }
 0x245   : > { %v2021_v21 = vpack.c.bf16 %v1663_v15, %v1663_v15  ;;  %v1666_v10 = vadd.f32 %v2965_v13, %v1665_v19 }
 0x246   : > { %1848 = vst.msk [vmem:[%s2973_s5 + $0x68] sm:$0xf] %vm1821_vm12, %v2023_v17  ;;  %v2024_v54 = vpack.c.bf16 %v1674_v18, %v1674_v18 }
 0x247   : > { %1846 = vst.msk [vmem:[%s2973_s5 + $0x60] sm:$0xf] %vm1821_vm12, %v2021_v21  ;;  %v2022_v22 = vpack.c.bf16 %v1666_v10, %v1666_v10 }
 0x248   : > { %1849 = vst.msk [vmem:[%s2973_s5 + $0x6c] sm:$0xf] %vm1821_vm12, %v2024_v54 }
 0x249   : > { %1847 = vst.msk [vmem:[%s2973_s5 + $0x64] sm:$0xf] %vm1821_vm12, %v2022_v22 }
 0x277   : > { %v2154_v23 = vpop.f32.mrb[12].mxu0 }
 0x278   : > { %v1623_v24 = vadd.f32 %v2154_v23, %v2965_v13  ;;  %v1614_v25 = vpop.f32.mrb[13].mxu0 }
 0x279   : > { %v1615_v26 = vadd.f32 %v2965_v13, %v1614_v25  ;;  %v2155_v14 = vpop.f32.mrb[14].mxu0 }
 0x27a   : > { %v2011_v59 = vpack.c.bf16 %v1623_v24, %v1623_v24  ;;  %v1626_v27 = vadd.f32 %v2155_v14, %v2965_v13  ;;  %v1617_v28 = vpop.f32.mrb[15].mxu0 }
 0x27b   : > { %v2009_v29 = vpack.c.bf16 %v1615_v26, %v1615_v26  ;;  %v1618_v30 = vadd.f32 %v2965_v13, %v1617_v28 }
 0x27c   : > { %1836 = vst.msk [vmem:[%s2973_s5 + $0x38] sm:$0xf] %vm1821_vm12, %v2011_v59  ;;  %v2012_v31 = vpack.c.bf16 %v1626_v27, %v1626_v27 }
 0x27d   : > { %1834 = vst.msk [vmem:[%s2973_s5 + $0x30] sm:$0xf] %vm1821_vm12, %v2009_v29  ;;  %v2010_v32 = vpack.c.bf16 %v1618_v30, %v1618_v30  ;;  %v2170_v33 = vpop.f32.mrb[12].mxu1 }
 0x27e   : > { %1837 = vst.msk [vmem:[%s2973_s5 + $0x3c] sm:$0xf] %vm1821_vm12, %v2012_v31  ;;  %v1687_v34 = vadd.f32 %v2170_v33, %v2965_v13  ;;  %v1678_v35 = vpop.f32.mrb[13].mxu1 }
 0x27f   : > { %1835 = vst.msk [vmem:[%s2973_s5 + $0x34] sm:$0xf] %vm1821_vm12, %v2010_v32  ;;  %v1679_v36 = vadd.f32 %v2965_v13, %v1678_v35  ;;  %v2171_v37 = vpop.f32.mrb[14].mxu1 }
 0x280   : > { %v2027_v38 = vpack.c.bf16 %v1687_v34, %v1687_v34  ;;  %v1690_v39 = vadd.f32 %v2171_v37, %v2965_v13  ;;  %v1681_v40 = vpop.f32.mrb[15].mxu1 }
 0x281   : > { %v2025_v42 = vpack.c.bf16 %v1679_v36, %v1679_v36  ;;  %v1682_v44 = vadd.f32 %v2965_v13, %v1681_v40 }
 0x282   : > { %1852 = vst.msk [vmem:[%s2973_s5 + $0x78] sm:$0xf] %vm1821_vm12, %v2027_v38  ;;  %v2028_v45 = vpack.c.bf16 %v1690_v39, %v1690_v39 }
 0x283   : > { %1850 = vst.msk [vmem:[%s2973_s5 + $0x70] sm:$0xf] %vm1821_vm12, %v2025_v42  ;;  %v2026_v46 = vpack.c.bf16 %v1682_v44, %v1682_v44 }
 0x284   : > { %1853 = vst.msk [vmem:[%s2973_s5 + $0x7c] sm:$0xf] %vm1821_vm12, %v2028_v45 }
 0x285   : > { %1851 = vst.msk [vmem:[%s2973_s5 + $0x74] sm:$0xf] %vm1821_vm12, %v2026_v46 }
 0x286   : > { %2251 = shalt.err (!%p2248_p3)
}
 0x287   : > { %s2252_s25 = scalar_lea.hbm %s3066_s11, 2048  ;;  %s2256_s28 = scalar_lea.hbm %s3124_s3, 4096 }
 0x288   : > { %p2253_p4 = scmp.ne.s32.totalorder %s3066_s11, %s2252_s25  ;;  %p2257_p9 = scmp.lt.u32.totalorder %s3066_s11, %s3124_s3 }
 0x289   : > { %p2258_p10 = scmp.lt.u32.totalorder %s2256_s28, %s2252_s25  ;;  %p2260_p12 = scmp.lt.u32.totalorder %s2252_s25, %s3066_s11 }
 0x28a   : > { %p2254_p7 = pnand %p2253_p4, %p2371_p5 }
 0x28b   : > { %p2259_p11 = por %p2258_p10, %p2257_p9 }
 0x28c   : > { %p2255_p8 = pneg %p2254_p7 }
 0x28d   : > { %p2261_p13 = por %p2260_p12, %p2259_p11 }
 0x28f   : > { %p2262_p0 = pnand %p2261_p13, %p2255_p8 }
 0x291   : > { %2265 = shalt.err (!%p2262_p0)
}
 0x292   : > { %s2312_s4 = smov 4  }
 0x293   : > { %2184 = dma.vmem_to_hbm [thread:$0]  (%p2371_p5), %s3070_s7, 2048, %s3066_s11, %s3078_s16, %s2310_s26, %s2310_s26, %s2312_s4  }
 0x294 PF: > { %p2190_p1 = scmp.ge.s32.totalorder %s2300_s15, 2  ;;  %s1883_s5 = sand.u32 1, %s2288_s12  }
 0x295   : > { %s1884_s6 = scalar_lea.sflag [#allocation5], %s1883_s5 }
 0x296   : > { %p2187_p2 = pnand %p2190_p1, %p2375_p6 }
 0x298   : > { %2283 = dma.done.wait (!%p2187_p2), %s1884_s6, 2048  }
 0x299   : > { %2285 = vsyncadd (!%p2187_p2), %s1884_s6, 4294965248  ;;  %p13_p3 = scmp.ge.s32.totalorder %s2358_s18, 4   ;;  %s3127_s12 = smov %s2292_s13 }
 0x29a   : > { %s3128_s13 = smov %s2296_s14  ;;  %s3129_s14 = smov %s2369_s21 }
 0x29b   : > { %s3130_s15 = smov %s2358_s18  ;;  %15 = sbr.rel (!%p13_p3) target bundleno = 3 (0x3), region = 69 }
 0x2a2   :  { %1889 = vsyncpa [#allocation5], 1 }
 0x2a3   :  { %1891 = vsyncpa [#allocation5 + $0x1], 1 }

</bundles_post_ra>
